<compile_context>
chip_gen: v7x
topology: tpu7x:2x2x1
jax: 0.10.0
libtpu: 0.0.40
codegen_flags: <defaults>
</compile_context>

<pallas_src>
import functools

import jax
import jax.numpy as jnp
from jax import lax
from jax.experimental import pallas as pl
from jax.experimental.pallas import tpu as pltpu


# ----------------------------------------------------------------------------
# Fused kernel: patch embedding -> [sep token] -> N x mLSTM block -> LN -> head
# One grid step == one batch element (parallel across TensorCores on v7x).
# ----------------------------------------------------------------------------
def _fused_forward_kernel(patches_ref, sep_ref, pe_w_ref, pe_b_ref,
                          ln_g_ref, ln_b_ref, w_qkvo_ref, b_qkvo_ref,
                          w_if_ref, b_if_ref,
                          out_ln_g_ref, out_ln_b_ref,
                          fc_w1_ref, fc_b1_ref, fc_w2_ref, fc_b2_ref,
                          out_ref, *, sep_pos, num_blocks):
    S = patches_ref.shape[1]
    E = pe_w_ref.shape[2] if pe_w_ref.ndim == 3 else pe_w_ref.shape[1]
    inv_sqrt_e = float(E) ** -0.5

    # ---- patch embedding (Conv1d k=stride=P rewritten as a matmul) + sep insert ----
    patches = patches_ref[0]                                        # (S, P*C); sep row is zeros
    emb = jnp.dot(patches, pe_w_ref[...],
                  preferred_element_type=jnp.float32) + pe_b_ref[...]
    row_idx = lax.broadcasted_iota(jnp.int32, (S, 1), 0)
    h = jnp.where(row_idx == sep_pos, sep_ref[...], emb)            # (S, E)

    # ---- shared causal machinery ----
    t_idx = lax.broadcasted_iota(jnp.int32, (S, S), 0)
    s_idx = lax.broadcasted_iota(jnp.int32, (S, S), 1)
    causal = s_idx <= t_idx                                         # [t, s]: s <= t
    causal_f = causal.astype(jnp.float32)
    eye_f = (s_idx == t_idx).astype(jnp.float32)
    ones_row = jnp.ones((1, S), jnp.float32)

    def col_to_row(col):
        # (S,1) -> (1,S) via a tiny MXU matmul (avoids XLU transpose / sublane reduce)
        return jnp.dot(ones_row, eye_f * col, preferred_element_type=jnp.float32)

    # ---- simplified pre-LN mLSTM blocks (stabilized parallel form) ----
    for bi in range(num_blocks):
        mu = jnp.mean(h, axis=-1, keepdims=True)
        var = jnp.mean((h - mu) ** 2, axis=-1, keepdims=True)
        xn = (h - mu) * lax.rsqrt(var + 1e-5) * ln_g_ref[bi] + ln_b_ref[bi]

        # lane-dense (S, 4E=128) q|k|v|og slab + small (S, 2) i/f projection
        slab = jnp.dot(xn, w_qkvo_ref[bi],
                       preferred_element_type=jnp.float32) + b_qkvo_ref[bi]
        gif = jnp.dot(xn, w_if_ref[bi],
                      preferred_element_type=jnp.float32) + b_if_ref[bi]

        q = slab[:, 0 * E:1 * E]
        k = slab[:, 1 * E:2 * E] * inv_sqrt_e
        v = slab[:, 2 * E:3 * E]
        og = slab[:, 3 * E:4 * E]
        i_col = gif[:, 0:1]                                         # (S, 1) input-gate pre-act
        f_col = gif[:, 1:2]                                         # (S, 1) forget-gate pre-act

        # numerically stable log-sigmoid: log σ(x) = min(x,0) - log(1 + exp(-|x|))
        logf_col = jnp.minimum(f_col, 0.0) - jnp.log(1.0 + jnp.exp(-jnp.abs(f_col)))

        # inclusive cumulative sum of log forget gates, via one tiny causal matmul
        cumf_col = jnp.dot(causal_f, logf_col,
                           preferred_element_type=jnp.float32)      # (S, 1): cumF[t]
        row_bias = col_to_row(i_col - cumf_col)                     # (1, S): i[s] - cumF[s]

        # logD[t,s] = cumF[t] - cumF[s] + i[s]   (s <= t); diagonal = i[t] (finite)
        log_d = jnp.where(causal, cumf_col + row_bias, -1e30)
        m_row = jnp.max(log_d, axis=1, keepdims=True)               # (S, 1) stabilizer
        d_mat = jnp.exp(log_d - m_row)

        scores = lax.dot_general(q, k, (((1,), (1,)), ((), ())),
                                 preferred_element_type=jnp.float32)  # q @ k^T
        c_mat = scores * d_mat
        norm = jnp.maximum(jnp.abs(jnp.sum(c_mat, axis=1, keepdims=True)),
                           jnp.exp(-m_row))
        h_att = jnp.dot(c_mat, v, preferred_element_type=jnp.float32) \
            * pl.reciprocal(norm, approx=True)
        h = h + jax.nn.sigmoid(og) * h_att                          # residual

    # ---- last token -> post-blocks LayerNorm -> Linear/ReLU/Linear head ----
    h_last = h[S - 1:S, :]                                          # (1, E)
    mu = jnp.mean(h_last, axis=-1, keepdims=True)
    var = jnp.mean((h_last - mu) ** 2, axis=-1, keepdims=True)
    xn = (h_last - mu) * lax.rsqrt(var + 1e-5) * out_ln_g_ref[...] + out_ln_b_ref[...]
    hid = jnp.maximum(
        jnp.dot(xn, fc_w1_ref[...], preferred_element_type=jnp.float32) + fc_b1_ref[...],
        0.0)                                                        # activation_fn = relu
    logits = jnp.dot(hid, fc_w2_ref[...],
                     preferred_element_type=jnp.float32) + fc_b2_ref[...]
    out_ref[0] = logits


def _bcast_spec(arr):
    zeros = (0,) * arr.ndim
    return pl.BlockSpec(arr.shape, lambda b, _z=zeros: _z)


# ----------------------------------------------------------------------------
# Parameters & wrapper
# ----------------------------------------------------------------------------
def init_params(key, *, C, P, E, num_classes, num_blocks):
    def nrm(k, shape, scale=0.02):
        return (scale * jax.random.normal(k, shape)).astype(jnp.float32)

    ks = jax.random.split(key, 6)
    return {
        # Conv1d(C, E, P, stride=P) weight, pre-permuted so row index = p*C + c
        "pe_w": nrm(ks[0], (P * C, E)),
        "pe_b": jnp.zeros((1, E), jnp.float32),
        "sep": nrm(ks[1], (1, E), scale=1.0),                # nn.Parameter(torch.randn(1,1,E))
        "blk_ln_g": jnp.ones((num_blocks, 1, E), jnp.float32),
        "blk_ln_b": jnp.zeros((num_blocks, 1, E), jnp.float32),
        "blk_w_qkvo": nrm(ks[2], (num_blocks, E, 4 * E)),    # q, k, v, output-gate
        "blk_b_qkvo": jnp.zeros((num_blocks, 1, 4 * E), jnp.float32),
        "blk_w_if": nrm(ks[3], (num_blocks, E, 2)),          # input-gate, forget-gate
        "blk_b_if": jnp.zeros((num_blocks, 1, 2), jnp.float32),
        "out_ln_g": jnp.ones((1, E), jnp.float32),
        "out_ln_b": jnp.zeros((1, E), jnp.float32),
        "fc_w1": nrm(ks[4], (E, E // 2)),
        "fc_b1": jnp.zeros((1, E // 2), jnp.float32),
        "fc_w2": nrm(ks[5], (E // 2, num_classes)),
        "fc_b2": jnp.zeros((1, num_classes), jnp.float32),
    }


def myxlstm_forward(params, ctx, x, *, P):
    # series_decomposition == 0 -> skipped; dropout -> identity (eval mode)
    B, L, C = x.shape
    Np = L // P
    PC = P * C
    S = 2 * Np + 1                                           # ctx patches + sep + x patches
    NC = params["fc_w2"].shape[1]
    NB = params["blk_w_qkvo"].shape[0]

    # Single reshape per input (pe_w is pre-permuted); zero row reserves the sep slot.
    patches = jnp.concatenate(
        [ctx.reshape(B, Np, PC),
         jnp.zeros((B, 1, PC), jnp.float32),
         x.reshape(B, Np, PC)], axis=1)                      # (B, S, P*C)

    weight_names = ("sep", "pe_w", "pe_b", "blk_ln_g", "blk_ln_b",
                    "blk_w_qkvo", "blk_b_qkvo", "blk_w_if", "blk_b_if",
                    "out_ln_g", "out_ln_b", "fc_w1", "fc_b1", "fc_w2", "fc_b2")
    weights = [params[n] for n in weight_names]

    out = pl.pallas_call(
        functools.partial(_fused_forward_kernel, sep_pos=Np, num_blocks=NB),
        out_shape=jax.ShapeDtypeStruct((B, 1, NC), jnp.float32),
        grid=(B,),
        in_specs=[pl.BlockSpec((1, S, PC), lambda b: (b, 0, 0))]
        + [_bcast_spec(w) for w in weights],
        out_specs=pl.BlockSpec((1, 1, NC), lambda b: (b, 0, 0)),
        compiler_params=pltpu.CompilerParams(dimension_semantics=("parallel",)),
    )(patches, *weights)
    return out[:, 0, :]


if __name__ == "__main__":
    B, L, C = 2, 64, 3          # batch, sequence length, input channels
    P, E = 8, 32                # patch_size, embedding_size
    NUM_CLASSES, NUM_BLOCKS = 5, 2

    key = jax.random.PRNGKey(0)
    kp, kc, kx = jax.random.split(key, 3)
    params = init_params(kp, C=C, P=P, E=E, num_classes=NUM_CLASSES,
                         num_blocks=NUM_BLOCKS)
    ctx = jax.random.normal(kc, (B, L, C), dtype=jnp.float32)
    x = jax.random.normal(kx, (B, L, C), dtype=jnp.float32)

    fwd = jax.jit(functools.partial(myxlstm_forward, P=P))
    out = fwd(params, ctx, x)
    jax.block_until_ready(out)
    assert out.shape == (B, NUM_CLASSES) and out.dtype == jnp.float32
    assert bool(jnp.all(jnp.isfinite(out)))
    print("KERNEL_OK")
</pallas_src>

<mosaic_0001>
module attributes {stable_mosaic.version = 11 : i64} {
  func.func @_fused_forward_kernel(%arg0: i32, %arg1: memref<1x17x24xf32, #tpu.memory_space<vmem>>, %arg2: memref<1x32xf32, #tpu.memory_space<vmem>>, %arg3: memref<24x32xf32, #tpu.memory_space<vmem>>, %arg4: memref<1x32xf32, #tpu.memory_space<vmem>>, %arg5: memref<2x1x32xf32, #tpu.memory_space<vmem>>, %arg6: memref<2x1x32xf32, #tpu.memory_space<vmem>>, %arg7: memref<2x32x128xf32, #tpu.memory_space<vmem>>, %arg8: memref<2x1x128xf32, #tpu.memory_space<vmem>>, %arg9: memref<2x32x2xf32, #tpu.memory_space<vmem>>, %arg10: memref<2x1x2xf32, #tpu.memory_space<vmem>>, %arg11: memref<1x32xf32, #tpu.memory_space<vmem>>, %arg12: memref<1x32xf32, #tpu.memory_space<vmem>>, %arg13: memref<32x16xf32, #tpu.memory_space<vmem>>, %arg14: memref<1x16xf32, #tpu.memory_space<vmem>>, %arg15: memref<16x5xf32, #tpu.memory_space<vmem>>, %arg16: memref<1x5xf32, #tpu.memory_space<vmem>>, %arg17: memref<1x1x5xf32, #tpu.memory_space<vmem>>) attributes {dimension_semantics = [#tpu.dimension_semantics<parallel>], iteration_bounds = array<i64: 2>, scalar_prefetch = 0 : i64, scratch_operands = 0 : i64, tpu.core_type = #tpu.core_type<tc>, window_params = [{transform_indices = @transform_0, window_bounds = array<i64: 1, 17, 24>}, {pipeline_mode = #tpu.pipeline_mode<synchronous>, transform_indices = @transform_1, window_bounds = array<i64: 1, 32>}, {pipeline_mode = #tpu.pipeline_mode<synchronous>, transform_indices = @transform_2, window_bounds = array<i64: 24, 32>}, {pipeline_mode = #tpu.pipeline_mode<synchronous>, transform_indices = @transform_3, window_bounds = array<i64: 1, 32>}, {pipeline_mode = #tpu.pipeline_mode<synchronous>, transform_indices = @transform_4, window_bounds = array<i64: 2, 1, 32>}, {pipeline_mode = #tpu.pipeline_mode<synchronous>, transform_indices = @transform_5, window_bounds = array<i64: 2, 1, 32>}, {pipeline_mode = #tpu.pipeline_mode<synchronous>, transform_indices = @transform_6, window_bounds = array<i64: 2, 32, 128>}, {pipeline_mode = #tpu.pipeline_mode<synchronous>, transform_indices = @transform_7, window_bounds = array<i64: 2, 1, 128>}, {pipeline_mode = #tpu.pipeline_mode<synchronous>, transform_indices = @transform_8, window_bounds = array<i64: 2, 32, 2>}, {pipeline_mode = #tpu.pipeline_mode<synchronous>, transform_indices = @transform_9, window_bounds = array<i64: 2, 1, 2>}, {pipeline_mode = #tpu.pipeline_mode<synchronous>, transform_indices = @transform_10, window_bounds = array<i64: 1, 32>}, {pipeline_mode = #tpu.pipeline_mode<synchronous>, transform_indices = @transform_11, window_bounds = array<i64: 1, 32>}, {pipeline_mode = #tpu.pipeline_mode<synchronous>, transform_indices = @transform_12, window_bounds = array<i64: 32, 16>}, {pipeline_mode = #tpu.pipeline_mode<synchronous>, transform_indices = @transform_13, window_bounds = array<i64: 1, 16>}, {pipeline_mode = #tpu.pipeline_mode<synchronous>, transform_indices = @transform_14, window_bounds = array<i64: 16, 5>}, {pipeline_mode = #tpu.pipeline_mode<synchronous>, transform_indices = @transform_15, window_bounds = array<i64: 1, 5>}, {transform_indices = @transform_16, window_bounds = array<i64: 1, 1, 5>}]} {
    %c0 = arith.constant 0 : index
    %c0_0 = arith.constant 0 : index
    %c0_1 = arith.constant 0 : index
    %0 = vector.load %arg1[%c0, %c0_0, %c0_1] : memref<1x17x24xf32, #tpu.memory_space<vmem>>, vector<1x17x24xf32>
    %1 = vector.shape_cast %0 : vector<1x17x24xf32> to vector<17x24xf32>
    %c0_2 = arith.constant 0 : index
    %c0_3 = arith.constant 0 : index
    %2 = vector.load %arg3[%c0_2, %c0_3] : memref<24x32xf32, #tpu.memory_space<vmem>>, vector<24x32xf32>
    %cst = arith.constant dense<0.000000e+00> : vector<17x32xf32>
    %3 = tpu.matmul %1, %2, %cst {dimension_numbers = #tpu.dot_dimension_numbers<[1], [0], [0], [1], [0, 0, 1, 1], [], []>} : vector<17x24xf32>, vector<24x32xf32>, vector<17x32xf32> -> vector<17x32xf32>
    %c0_4 = arith.constant 0 : index
    %c0_5 = arith.constant 0 : index
    %4 = vector.load %arg4[%c0_4, %c0_5] : memref<1x32xf32, #tpu.memory_space<vmem>>, vector<1x32xf32>
    %5 = vector.broadcast %4 : vector<1x32xf32> to vector<17x32xf32>
    %6 = arith.addf %3, %5 : vector<17x32xf32>
    %7 = tpu.iota {dimensions = array<i32: 0>} : vector<17x1xi32>
    %c8_i32 = arith.constant 8 : i32
    %8 = vector.broadcast %c8_i32 : i32 to vector<17x1xi32>
    %9 = arith.cmpi eq, %7, %8 : vector<17x1xi32>
    %c0_6 = arith.constant 0 : index
    %c0_7 = arith.constant 0 : index
    %10 = vector.load %arg2[%c0_6, %c0_7] : memref<1x32xf32, #tpu.memory_space<vmem>>, vector<1x32xf32>
    %11 = vector.shape_cast %9 : vector<17x1xi1> to vector<17x1xi1>
    %12 = vector.broadcast %11 : vector<17x1xi1> to vector<17x32xi1>
    %13 = vector.shape_cast %10 : vector<1x32xf32> to vector<1x32xf32>
    %14 = vector.broadcast %13 : vector<1x32xf32> to vector<17x32xf32>
    %15 = arith.select %12, %14, %6 : vector<17x32xi1>, vector<17x32xf32>
    %16 = tpu.iota {dimensions = array<i32: 0>} : vector<17x17xi32>
    %17 = tpu.iota {dimensions = array<i32: 1>} : vector<17x17xi32>
    %18 = arith.cmpi sle, %17, %16 : vector<17x17xi32>
    %19 = arith.extui %18 : vector<17x17xi1> to vector<17x17xi32>
    %20 = arith.sitofp %19 : vector<17x17xi32> to vector<17x17xf32>
    %21 = arith.cmpi eq, %17, %16 : vector<17x17xi32>
    %22 = arith.extui %21 : vector<17x17xi1> to vector<17x17xi32>
    %23 = arith.sitofp %22 : vector<17x17xi32> to vector<17x17xf32>
    %cst_8 = arith.constant 1.000000e+00 : f32
    %24 = vector.broadcast %cst_8 : f32 to vector<1x17xf32>
    %cst_9 = arith.constant dense<0.000000e+00> : vector<17xf32>
    %25 = vector.multi_reduction <add>, %15, %cst_9 [1] : vector<17x32xf32> to vector<17xf32>
    %26 = vector.shape_cast %25 : vector<17xf32> to vector<17x1xf32>
    %cst_10 = arith.constant 3.200000e+01 : f32
    %27 = vector.broadcast %cst_10 : f32 to vector<17x1xf32>
    %28 = arith.divf %26, %27 : vector<17x1xf32>
    %29 = vector.broadcast %28 : vector<17x1xf32> to vector<17x32xf32>
    %30 = arith.subf %15, %29 : vector<17x32xf32>
    %31 = arith.mulf %30, %30 : vector<17x32xf32>
    %cst_11 = arith.constant dense<0.000000e+00> : vector<17xf32>
    %32 = vector.multi_reduction <add>, %31, %cst_11 [1] : vector<17x32xf32> to vector<17xf32>
    %33 = vector.shape_cast %32 : vector<17xf32> to vector<17x1xf32>
    %cst_12 = arith.constant 3.200000e+01 : f32
    %34 = vector.broadcast %cst_12 : f32 to vector<17x1xf32>
    %35 = arith.divf %33, %34 : vector<17x1xf32>
    %36 = vector.broadcast %28 : vector<17x1xf32> to vector<17x32xf32>
    %37 = arith.subf %15, %36 : vector<17x32xf32>
    %cst_13 = arith.constant 9.99999974E-6 : f32
    %38 = vector.broadcast %cst_13 : f32 to vector<17x1xf32>
    %39 = arith.addf %35, %38 : vector<17x1xf32>
    %40 = math.rsqrt %39 : vector<17x1xf32>
    %41 = vector.broadcast %40 : vector<17x1xf32> to vector<17x32xf32>
    %42 = arith.mulf %37, %41 : vector<17x32xf32>
    %c0_14 = arith.constant 0 : index
    %c0_15 = arith.constant 0 : index
    %c0_16 = arith.constant 0 : index
    %43 = vector.load %arg5[%c0_14, %c0_15, %c0_16] : memref<2x1x32xf32, #tpu.memory_space<vmem>>, vector<1x1x32xf32>
    %44 = vector.shape_cast %43 : vector<1x1x32xf32> to vector<1x32xf32>
    %45 = vector.broadcast %44 : vector<1x32xf32> to vector<17x32xf32>
    %46 = arith.mulf %42, %45 : vector<17x32xf32>
    %c0_17 = arith.constant 0 : index
    %c0_18 = arith.constant 0 : index
    %c0_19 = arith.constant 0 : index
    %47 = vector.load %arg6[%c0_17, %c0_18, %c0_19] : memref<2x1x32xf32, #tpu.memory_space<vmem>>, vector<1x1x32xf32>
    %48 = vector.shape_cast %47 : vector<1x1x32xf32> to vector<1x32xf32>
    %49 = vector.broadcast %48 : vector<1x32xf32> to vector<17x32xf32>
    %50 = arith.addf %46, %49 : vector<17x32xf32>
    %c0_20 = arith.constant 0 : index
    %c0_21 = arith.constant 0 : index
    %c0_22 = arith.constant 0 : index
    %51 = vector.load %arg7[%c0_20, %c0_21, %c0_22] : memref<2x32x128xf32, #tpu.memory_space<vmem>>, vector<1x32x128xf32>
    %52 = vector.shape_cast %51 : vector<1x32x128xf32> to vector<32x128xf32>
    %cst_23 = arith.constant dense<0.000000e+00> : vector<17x128xf32>
    %53 = tpu.matmul %50, %52, %cst_23 {dimension_numbers = #tpu.dot_dimension_numbers<[1], [0], [0], [1], [0, 0, 1, 1], [], []>} : vector<17x32xf32>, vector<32x128xf32>, vector<17x128xf32> -> vector<17x128xf32>
    %c0_24 = arith.constant 0 : index
    %c0_25 = arith.constant 0 : index
    %c0_26 = arith.constant 0 : index
    %54 = vector.load %arg8[%c0_24, %c0_25, %c0_26] : memref<2x1x128xf32, #tpu.memory_space<vmem>>, vector<1x1x128xf32>
    %55 = vector.shape_cast %54 : vector<1x1x128xf32> to vector<1x128xf32>
    %56 = vector.broadcast %55 : vector<1x128xf32> to vector<17x128xf32>
    %57 = arith.addf %53, %56 : vector<17x128xf32>
    %c0_27 = arith.constant 0 : index
    %c0_28 = arith.constant 0 : index
    %c0_29 = arith.constant 0 : index
    %58 = vector.load %arg9[%c0_27, %c0_28, %c0_29] : memref<2x32x2xf32, #tpu.memory_space<vmem>>, vector<1x32x2xf32>
    %59 = vector.shape_cast %58 : vector<1x32x2xf32> to vector<32x2xf32>
    %cst_30 = arith.constant dense<0.000000e+00> : vector<17x2xf32>
    %60 = tpu.matmul %50, %59, %cst_30 {dimension_numbers = #tpu.dot_dimension_numbers<[1], [0], [0], [1], [0, 0, 1, 1], [], []>} : vector<17x32xf32>, vector<32x2xf32>, vector<17x2xf32> -> vector<17x2xf32>
    %c0_31 = arith.constant 0 : index
    %c0_32 = arith.constant 0 : index
    %c0_33 = arith.constant 0 : index
    %61 = vector.load %arg10[%c0_31, %c0_32, %c0_33] : memref<2x1x2xf32, #tpu.memory_space<vmem>>, vector<1x1x2xf32>
    %62 = vector.shape_cast %61 : vector<1x1x2xf32> to vector<1x2xf32>
    %63 = vector.broadcast %62 : vector<1x2xf32> to vector<17x2xf32>
    %64 = arith.addf %60, %63 : vector<17x2xf32>
    %65 = vector.extract_strided_slice %57 {offsets = [0, 0], sizes = [17, 32], strides = [1, 1]} : vector<17x128xf32> to vector<17x32xf32>
    %66 = vector.extract_strided_slice %57 {offsets = [0, 32], sizes = [17, 32], strides = [1, 1]} : vector<17x128xf32> to vector<17x32xf32>
    %cst_34 = arith.constant 0.176776692 : f32
    %67 = vector.broadcast %cst_34 : f32 to vector<17x32xf32>
    %68 = arith.mulf %66, %67 : vector<17x32xf32>
    %69 = vector.extract_strided_slice %57 {offsets = [0, 64], sizes = [17, 32], strides = [1, 1]} : vector<17x128xf32> to vector<17x32xf32>
    %70 = vector.extract_strided_slice %57 {offsets = [0, 96], sizes = [17, 32], strides = [1, 1]} : vector<17x128xf32> to vector<17x32xf32>
    %71 = vector.extract_strided_slice %64 {offsets = [0, 0], sizes = [17, 1], strides = [1, 1]} : vector<17x2xf32> to vector<17x1xf32>
    %72 = vector.extract_strided_slice %64 {offsets = [0, 1], sizes = [17, 1], strides = [1, 1]} : vector<17x2xf32> to vector<17x1xf32>
    %cst_35 = arith.constant 0.000000e+00 : f32
    %73 = vector.broadcast %cst_35 : f32 to vector<17x1xf32>
    %74 = arith.minimumf %72, %73 : vector<17x1xf32>
    %75 = math.absf %72 : vector<17x1xf32>
    %cst_36 = arith.constant 0.000000e+00 : f32
    %76 = vector.broadcast %cst_36 : f32 to vector<17x1xf32>
    %77 = arith.subf %76, %75 : vector<17x1xf32>
    %78 = math.exp %77 : vector<17x1xf32>
    %cst_37 = arith.constant 1.000000e+00 : f32
    %79 = vector.broadcast %cst_37 : f32 to vector<17x1xf32>
    %80 = arith.addf %79, %78 : vector<17x1xf32>
    %81 = math.log %80 : vector<17x1xf32>
    %82 = arith.subf %74, %81 : vector<17x1xf32>
    %cst_38 = arith.constant dense<0.000000e+00> : vector<17x1xf32>
    %83 = tpu.matmul %20, %82, %cst_38 {dimension_numbers = #tpu.dot_dimension_numbers<[1], [0], [0], [1], [0, 0, 1, 1], [], []>} : vector<17x17xf32>, vector<17x1xf32>, vector<17x1xf32> -> vector<17x1xf32>
    %84 = arith.subf %71, %83 : vector<17x1xf32>
    %85 = vector.broadcast %84 : vector<17x1xf32> to vector<17x17xf32>
    %86 = arith.mulf %23, %85 : vector<17x17xf32>
    %cst_39 = arith.constant dense<0.000000e+00> : vector<1x17xf32>
    %87 = tpu.matmul %24, %86, %cst_39 {dimension_numbers = #tpu.dot_dimension_numbers<[1], [0], [0], [1], [0, 0, 1, 1], [], []>} : vector<1x17xf32>, vector<17x17xf32>, vector<1x17xf32> -> vector<1x17xf32>
    %88 = vector.broadcast %83 : vector<17x1xf32> to vector<17x17xf32>
    %89 = vector.broadcast %87 : vector<1x17xf32> to vector<17x17xf32>
    %90 = arith.addf %88, %89 : vector<17x17xf32>
    %cst_40 = arith.constant -1.000000e+30 : f32
    %91 = vector.broadcast %cst_40 : f32 to vector<17x17xf32>
    %92 = arith.select %18, %90, %91 : vector<17x17xi1>, vector<17x17xf32>
    %cst_41 = arith.constant dense<0xFF800000> : vector<17xf32>
    %93 = vector.multi_reduction <maximumf>, %92, %cst_41 [1] : vector<17x17xf32> to vector<17xf32>
    %94 = vector.shape_cast %93 : vector<17xf32> to vector<17x1xf32>
    %95 = vector.broadcast %94 : vector<17x1xf32> to vector<17x17xf32>
    %96 = arith.subf %92, %95 : vector<17x17xf32>
    %97 = math.exp %96 : vector<17x17xf32>
    %cst_42 = arith.constant dense<0.000000e+00> : vector<17x17xf32>
    %98 = tpu.matmul %65, %68, %cst_42 {dimension_numbers = #tpu.dot_dimension_numbers<[1], [1], [0], [0], [0, 0, 1, 0], [], []>} : vector<17x32xf32>, vector<17x32xf32>, vector<17x17xf32> -> vector<17x17xf32>
    %99 = arith.mulf %98, %97 : vector<17x17xf32>
    %cst_43 = arith.constant dense<0.000000e+00> : vector<17xf32>
    %100 = vector.multi_reduction <add>, %99, %cst_43 [1] : vector<17x17xf32> to vector<17xf32>
    %101 = vector.shape_cast %100 : vector<17xf32> to vector<17x1xf32>
    %102 = math.absf %101 : vector<17x1xf32>
    %cst_44 = arith.constant 0.000000e+00 : f32
    %103 = vector.broadcast %cst_44 : f32 to vector<17x1xf32>
    %104 = arith.subf %103, %94 : vector<17x1xf32>
    %105 = math.exp %104 : vector<17x1xf32>
    %106 = arith.maximumf %102, %105 : vector<17x1xf32>
    %cst_45 = arith.constant dense<0.000000e+00> : vector<17x32xf32>
    %107 = tpu.matmul %99, %69, %cst_45 {dimension_numbers = #tpu.dot_dimension_numbers<[1], [0], [0], [1], [0, 0, 1, 1], [], []>} : vector<17x17xf32>, vector<17x32xf32>, vector<17x32xf32> -> vector<17x32xf32>
    %108 = tpu.reciprocal %106 {approx = true} : vector<17x1xf32> -> vector<17x1xf32>
    %109 = vector.broadcast %108 : vector<17x1xf32> to vector<17x32xf32>
    %110 = arith.mulf %107, %109 : vector<17x32xf32>
    %111 = arith.negf %70 : vector<17x32xf32>
    %112 = math.exp %111 : vector<17x32xf32>
    %cst_46 = arith.constant 1.000000e+00 : f32
    %113 = vector.broadcast %cst_46 : f32 to vector<17x32xf32>
    %114 = arith.addf %113, %112 : vector<17x32xf32>
    %115 = arith.divf %113, %114 : vector<17x32xf32>
    %116 = arith.mulf %115, %110 : vector<17x32xf32>
    %117 = arith.addf %15, %116 : vector<17x32xf32>
    %cst_47 = arith.constant dense<0.000000e+00> : vector<17xf32>
    %118 = vector.multi_reduction <add>, %117, %cst_47 [1] : vector<17x32xf32> to vector<17xf32>
    %119 = vector.shape_cast %118 : vector<17xf32> to vector<17x1xf32>
    %cst_48 = arith.constant 3.200000e+01 : f32
    %120 = vector.broadcast %cst_48 : f32 to vector<17x1xf32>
    %121 = arith.divf %119, %120 : vector<17x1xf32>
    %122 = vector.broadcast %121 : vector<17x1xf32> to vector<17x32xf32>
    %123 = arith.subf %117, %122 : vector<17x32xf32>
    %124 = arith.mulf %123, %123 : vector<17x32xf32>
    %cst_49 = arith.constant dense<0.000000e+00> : vector<17xf32>
    %125 = vector.multi_reduction <add>, %124, %cst_49 [1] : vector<17x32xf32> to vector<17xf32>
    %126 = vector.shape_cast %125 : vector<17xf32> to vector<17x1xf32>
    %cst_50 = arith.constant 3.200000e+01 : f32
    %127 = vector.broadcast %cst_50 : f32 to vector<17x1xf32>
    %128 = arith.divf %126, %127 : vector<17x1xf32>
    %129 = vector.broadcast %121 : vector<17x1xf32> to vector<17x32xf32>
    %130 = arith.subf %117, %129 : vector<17x32xf32>
    %cst_51 = arith.constant 9.99999974E-6 : f32
    %131 = vector.broadcast %cst_51 : f32 to vector<17x1xf32>
    %132 = arith.addf %128, %131 : vector<17x1xf32>
    %133 = math.rsqrt %132 : vector<17x1xf32>
    %134 = vector.broadcast %133 : vector<17x1xf32> to vector<17x32xf32>
    %135 = arith.mulf %130, %134 : vector<17x32xf32>
    %c1 = arith.constant 1 : index
    %c0_52 = arith.constant 0 : index
    %c0_53 = arith.constant 0 : index
    %136 = vector.load %arg5[%c1, %c0_52, %c0_53] : memref<2x1x32xf32, #tpu.memory_space<vmem>>, vector<1x1x32xf32>
    %137 = vector.shape_cast %136 : vector<1x1x32xf32> to vector<1x32xf32>
    %138 = vector.broadcast %137 : vector<1x32xf32> to vector<17x32xf32>
    %139 = arith.mulf %135, %138 : vector<17x32xf32>
    %c1_54 = arith.constant 1 : index
    %c0_55 = arith.constant 0 : index
    %c0_56 = arith.constant 0 : index
    %140 = vector.load %arg6[%c1_54, %c0_55, %c0_56] : memref<2x1x32xf32, #tpu.memory_space<vmem>>, vector<1x1x32xf32>
    %141 = vector.shape_cast %140 : vector<1x1x32xf32> to vector<1x32xf32>
    %142 = vector.broadcast %141 : vector<1x32xf32> to vector<17x32xf32>
    %143 = arith.addf %139, %142 : vector<17x32xf32>
    %c1_57 = arith.constant 1 : index
    %c0_58 = arith.constant 0 : index
    %c0_59 = arith.constant 0 : index
    %144 = vector.load %arg7[%c1_57, %c0_58, %c0_59] : memref<2x32x128xf32, #tpu.memory_space<vmem>>, vector<1x32x128xf32>
    %145 = vector.shape_cast %144 : vector<1x32x128xf32> to vector<32x128xf32>
    %cst_60 = arith.constant dense<0.000000e+00> : vector<17x128xf32>
    %146 = tpu.matmul %143, %145, %cst_60 {dimension_numbers = #tpu.dot_dimension_numbers<[1], [0], [0], [1], [0, 0, 1, 1], [], []>} : vector<17x32xf32>, vector<32x128xf32>, vector<17x128xf32> -> vector<17x128xf32>
    %c1_61 = arith.constant 1 : index
    %c0_62 = arith.constant 0 : index
    %c0_63 = arith.constant 0 : index
    %147 = vector.load %arg8[%c1_61, %c0_62, %c0_63] : memref<2x1x128xf32, #tpu.memory_space<vmem>>, vector<1x1x128xf32>
    %148 = vector.shape_cast %147 : vector<1x1x128xf32> to vector<1x128xf32>
    %149 = vector.broadcast %148 : vector<1x128xf32> to vector<17x128xf32>
    %150 = arith.addf %146, %149 : vector<17x128xf32>
    %c1_64 = arith.constant 1 : index
    %c0_65 = arith.constant 0 : index
    %c0_66 = arith.constant 0 : index
    %151 = vector.load %arg9[%c1_64, %c0_65, %c0_66] : memref<2x32x2xf32, #tpu.memory_space<vmem>>, vector<1x32x2xf32>
    %152 = vector.shape_cast %151 : vector<1x32x2xf32> to vector<32x2xf32>
    %cst_67 = arith.constant dense<0.000000e+00> : vector<17x2xf32>
    %153 = tpu.matmul %143, %152, %cst_67 {dimension_numbers = #tpu.dot_dimension_numbers<[1], [0], [0], [1], [0, 0, 1, 1], [], []>} : vector<17x32xf32>, vector<32x2xf32>, vector<17x2xf32> -> vector<17x2xf32>
    %c1_68 = arith.constant 1 : index
    %c0_69 = arith.constant 0 : index
    %c0_70 = arith.constant 0 : index
    %154 = vector.load %arg10[%c1_68, %c0_69, %c0_70] : memref<2x1x2xf32, #tpu.memory_space<vmem>>, vector<1x1x2xf32>
    %155 = vector.shape_cast %154 : vector<1x1x2xf32> to vector<1x2xf32>
    %156 = vector.broadcast %155 : vector<1x2xf32> to vector<17x2xf32>
    %157 = arith.addf %153, %156 : vector<17x2xf32>
    %158 = vector.extract_strided_slice %150 {offsets = [0, 0], sizes = [17, 32], strides = [1, 1]} : vector<17x128xf32> to vector<17x32xf32>
    %159 = vector.extract_strided_slice %150 {offsets = [0, 32], sizes = [17, 32], strides = [1, 1]} : vector<17x128xf32> to vector<17x32xf32>
    %cst_71 = arith.constant 0.176776692 : f32
    %160 = vector.broadcast %cst_71 : f32 to vector<17x32xf32>
    %161 = arith.mulf %159, %160 : vector<17x32xf32>
    %162 = vector.extract_strided_slice %150 {offsets = [0, 64], sizes = [17, 32], strides = [1, 1]} : vector<17x128xf32> to vector<17x32xf32>
    %163 = vector.extract_strided_slice %150 {offsets = [0, 96], sizes = [17, 32], strides = [1, 1]} : vector<17x128xf32> to vector<17x32xf32>
    %164 = vector.extract_strided_slice %157 {offsets = [0, 0], sizes = [17, 1], strides = [1, 1]} : vector<17x2xf32> to vector<17x1xf32>
    %165 = vector.extract_strided_slice %157 {offsets = [0, 1], sizes = [17, 1], strides = [1, 1]} : vector<17x2xf32> to vector<17x1xf32>
    %cst_72 = arith.constant 0.000000e+00 : f32
    %166 = vector.broadcast %cst_72 : f32 to vector<17x1xf32>
    %167 = arith.minimumf %165, %166 : vector<17x1xf32>
    %168 = math.absf %165 : vector<17x1xf32>
    %cst_73 = arith.constant 0.000000e+00 : f32
    %169 = vector.broadcast %cst_73 : f32 to vector<17x1xf32>
    %170 = arith.subf %169, %168 : vector<17x1xf32>
    %171 = math.exp %170 : vector<17x1xf32>
    %cst_74 = arith.constant 1.000000e+00 : f32
    %172 = vector.broadcast %cst_74 : f32 to vector<17x1xf32>
    %173 = arith.addf %172, %171 : vector<17x1xf32>
    %174 = math.log %173 : vector<17x1xf32>
    %175 = arith.subf %167, %174 : vector<17x1xf32>
    %cst_75 = arith.constant dense<0.000000e+00> : vector<17x1xf32>
    %176 = tpu.matmul %20, %175, %cst_75 {dimension_numbers = #tpu.dot_dimension_numbers<[1], [0], [0], [1], [0, 0, 1, 1], [], []>} : vector<17x17xf32>, vector<17x1xf32>, vector<17x1xf32> -> vector<17x1xf32>
    %177 = arith.subf %164, %176 : vector<17x1xf32>
    %178 = vector.broadcast %177 : vector<17x1xf32> to vector<17x17xf32>
    %179 = arith.mulf %23, %178 : vector<17x17xf32>
    %cst_76 = arith.constant dense<0.000000e+00> : vector<1x17xf32>
    %180 = tpu.matmul %24, %179, %cst_76 {dimension_numbers = #tpu.dot_dimension_numbers<[1], [0], [0], [1], [0, 0, 1, 1], [], []>} : vector<1x17xf32>, vector<17x17xf32>, vector<1x17xf32> -> vector<1x17xf32>
    %181 = vector.broadcast %176 : vector<17x1xf32> to vector<17x17xf32>
    %182 = vector.broadcast %180 : vector<1x17xf32> to vector<17x17xf32>
    %183 = arith.addf %181, %182 : vector<17x17xf32>
    %cst_77 = arith.constant -1.000000e+30 : f32
    %184 = vector.broadcast %cst_77 : f32 to vector<17x17xf32>
    %185 = arith.select %18, %183, %184 : vector<17x17xi1>, vector<17x17xf32>
    %cst_78 = arith.constant dense<0xFF800000> : vector<17xf32>
    %186 = vector.multi_reduction <maximumf>, %185, %cst_78 [1] : vector<17x17xf32> to vector<17xf32>
    %187 = vector.shape_cast %186 : vector<17xf32> to vector<17x1xf32>
    %188 = vector.broadcast %187 : vector<17x1xf32> to vector<17x17xf32>
    %189 = arith.subf %185, %188 : vector<17x17xf32>
    %190 = math.exp %189 : vector<17x17xf32>
    %cst_79 = arith.constant dense<0.000000e+00> : vector<17x17xf32>
    %191 = tpu.matmul %158, %161, %cst_79 {dimension_numbers = #tpu.dot_dimension_numbers<[1], [1], [0], [0], [0, 0, 1, 0], [], []>} : vector<17x32xf32>, vector<17x32xf32>, vector<17x17xf32> -> vector<17x17xf32>
    %192 = arith.mulf %191, %190 : vector<17x17xf32>
    %cst_80 = arith.constant dense<0.000000e+00> : vector<17xf32>
    %193 = vector.multi_reduction <add>, %192, %cst_80 [1] : vector<17x17xf32> to vector<17xf32>
    %194 = vector.shape_cast %193 : vector<17xf32> to vector<17x1xf32>
    %195 = math.absf %194 : vector<17x1xf32>
    %cst_81 = arith.constant 0.000000e+00 : f32
    %196 = vector.broadcast %cst_81 : f32 to vector<17x1xf32>
    %197 = arith.subf %196, %187 : vector<17x1xf32>
    %198 = math.exp %197 : vector<17x1xf32>
    %199 = arith.maximumf %195, %198 : vector<17x1xf32>
    %cst_82 = arith.constant dense<0.000000e+00> : vector<17x32xf32>
    %200 = tpu.matmul %192, %162, %cst_82 {dimension_numbers = #tpu.dot_dimension_numbers<[1], [0], [0], [1], [0, 0, 1, 1], [], []>} : vector<17x17xf32>, vector<17x32xf32>, vector<17x32xf32> -> vector<17x32xf32>
    %201 = tpu.reciprocal %199 {approx = true} : vector<17x1xf32> -> vector<17x1xf32>
    %202 = vector.broadcast %201 : vector<17x1xf32> to vector<17x32xf32>
    %203 = arith.mulf %200, %202 : vector<17x32xf32>
    %204 = arith.negf %163 : vector<17x32xf32>
    %205 = math.exp %204 : vector<17x32xf32>
    %cst_83 = arith.constant 1.000000e+00 : f32
    %206 = vector.broadcast %cst_83 : f32 to vector<17x32xf32>
    %207 = arith.addf %206, %205 : vector<17x32xf32>
    %208 = arith.divf %206, %207 : vector<17x32xf32>
    %209 = arith.mulf %208, %203 : vector<17x32xf32>
    %210 = arith.addf %117, %209 : vector<17x32xf32>
    %211 = vector.extract_strided_slice %210 {offsets = [16, 0], sizes = [1, 32], strides = [1, 1]} : vector<17x32xf32> to vector<1x32xf32>
    %cst_84 = arith.constant dense<0.000000e+00> : vector<1xf32>
    %212 = vector.multi_reduction <add>, %211, %cst_84 [1] : vector<1x32xf32> to vector<1xf32>
    %213 = vector.shape_cast %212 : vector<1xf32> to vector<1x1xf32>
    %cst_85 = arith.constant 3.200000e+01 : f32
    %214 = vector.broadcast %cst_85 : f32 to vector<1x1xf32>
    %215 = arith.divf %213, %214 : vector<1x1xf32>
    %216 = vector.broadcast %215 : vector<1x1xf32> to vector<1x32xf32>
    %217 = arith.subf %211, %216 : vector<1x32xf32>
    %218 = arith.mulf %217, %217 : vector<1x32xf32>
    %cst_86 = arith.constant dense<0.000000e+00> : vector<1xf32>
    %219 = vector.multi_reduction <add>, %218, %cst_86 [1] : vector<1x32xf32> to vector<1xf32>
    %220 = vector.shape_cast %219 : vector<1xf32> to vector<1x1xf32>
    %cst_87 = arith.constant 3.200000e+01 : f32
    %221 = vector.broadcast %cst_87 : f32 to vector<1x1xf32>
    %222 = arith.divf %220, %221 : vector<1x1xf32>
    %223 = vector.broadcast %215 : vector<1x1xf32> to vector<1x32xf32>
    %224 = arith.subf %211, %223 : vector<1x32xf32>
    %cst_88 = arith.constant 9.99999974E-6 : f32
    %225 = vector.broadcast %cst_88 : f32 to vector<1x1xf32>
    %226 = arith.addf %222, %225 : vector<1x1xf32>
    %227 = math.rsqrt %226 : vector<1x1xf32>
    %228 = vector.broadcast %227 : vector<1x1xf32> to vector<1x32xf32>
    %229 = arith.mulf %224, %228 : vector<1x32xf32>
    %c0_89 = arith.constant 0 : index
    %c0_90 = arith.constant 0 : index
    %230 = vector.load %arg11[%c0_89, %c0_90] : memref<1x32xf32, #tpu.memory_space<vmem>>, vector<1x32xf32>
    %231 = arith.mulf %229, %230 : vector<1x32xf32>
    %c0_91 = arith.constant 0 : index
    %c0_92 = arith.constant 0 : index
    %232 = vector.load %arg12[%c0_91, %c0_92] : memref<1x32xf32, #tpu.memory_space<vmem>>, vector<1x32xf32>
    %233 = arith.addf %231, %232 : vector<1x32xf32>
    %c0_93 = arith.constant 0 : index
    %c0_94 = arith.constant 0 : index
    %234 = vector.load %arg13[%c0_93, %c0_94] : memref<32x16xf32, #tpu.memory_space<vmem>>, vector<32x16xf32>
    %cst_95 = arith.constant dense<0.000000e+00> : vector<1x16xf32>
    %235 = tpu.matmul %233, %234, %cst_95 {dimension_numbers = #tpu.dot_dimension_numbers<[1], [0], [0], [1], [0, 0, 1, 1], [], []>} : vector<1x32xf32>, vector<32x16xf32>, vector<1x16xf32> -> vector<1x16xf32>
    %c0_96 = arith.constant 0 : index
    %c0_97 = arith.constant 0 : index
    %236 = vector.load %arg14[%c0_96, %c0_97] : memref<1x16xf32, #tpu.memory_space<vmem>>, vector<1x16xf32>
    %237 = arith.addf %235, %236 : vector<1x16xf32>
    %cst_98 = arith.constant 0.000000e+00 : f32
    %238 = vector.broadcast %cst_98 : f32 to vector<1x16xf32>
    %239 = arith.maximumf %237, %238 : vector<1x16xf32>
    %c0_99 = arith.constant 0 : index
    %c0_100 = arith.constant 0 : index
    %240 = vector.load %arg15[%c0_99, %c0_100] : memref<16x5xf32, #tpu.memory_space<vmem>>, vector<16x5xf32>
    %cst_101 = arith.constant dense<0.000000e+00> : vector<1x5xf32>
    %241 = tpu.matmul %239, %240, %cst_101 {dimension_numbers = #tpu.dot_dimension_numbers<[1], [0], [0], [1], [0, 0, 1, 1], [], []>} : vector<1x16xf32>, vector<16x5xf32>, vector<1x5xf32> -> vector<1x5xf32>
    %c0_102 = arith.constant 0 : index
    %c0_103 = arith.constant 0 : index
    %242 = vector.load %arg16[%c0_102, %c0_103] : memref<1x5xf32, #tpu.memory_space<vmem>>, vector<1x5xf32>
    %243 = arith.addf %241, %242 : vector<1x5xf32>
    %c0_104 = arith.constant 0 : index
    %c0_105 = arith.constant 0 : index
    %c0_106 = arith.constant 0 : index
    %244 = vector.load %arg17[%c0_104, %c0_105, %c0_106] : memref<1x1x5xf32, #tpu.memory_space<vmem>>, vector<1x1x5xf32>
    %245 = vector.shape_cast %244 : vector<1x1x5xf32> to vector<1x5xf32>
    %246 = vector.shape_cast %243 : vector<1x5xf32> to vector<1x1x5xf32>
    tpu.vector_store %arg17[%c0_104, %c0_105, %c0_106], %246 {strides = array<i32>} : memref<1x1x5xf32, #tpu.memory_space<vmem>>, vector<1x1x5xf32>,
    return
  }
  func.func @transform_0(%arg0: i32) -> (i32, i32, i32) {
    %c0_i32 = arith.constant 0 : i32
    %c0_i32_0 = arith.constant 0 : i32
    %c0_i32_1 = arith.constant 0 : i32
    return %arg0, %c0_i32, %c0_i32_0 : i32, i32, i32
  }
  func.func @transform_1(%arg0: i32) -> (i32, i32) {
    %c0_i32 = arith.constant 0 : i32
    %c0_i32_0 = arith.constant 0 : i32
    %c0_i32_1 = arith.constant 0 : i32
    return %c0_i32, %c0_i32_0 : i32, i32
  }
  func.func @transform_2(%arg0: i32) -> (i32, i32) {
    %c0_i32 = arith.constant 0 : i32
    %c0_i32_0 = arith.constant 0 : i32
    %c0_i32_1 = arith.constant 0 : i32
    return %c0_i32, %c0_i32_0 : i32, i32
  }
  func.func @transform_3(%arg0: i32) -> (i32, i32) {
    %c0_i32 = arith.constant 0 : i32
    %c0_i32_0 = arith.constant 0 : i32
    %c0_i32_1 = arith.constant 0 : i32
    return %c0_i32, %c0_i32_0 : i32, i32
  }
  func.func @transform_4(%arg0: i32) -> (i32, i32, i32) {
    %c0_i32 = arith.constant 0 : i32
    %c0_i32_0 = arith.constant 0 : i32
    %c0_i32_1 = arith.constant 0 : i32
    %c0_i32_2 = arith.constant 0 : i32
    return %c0_i32, %c0_i32_0, %c0_i32_1 : i32, i32, i32
  }
  func.func @transform_5(%arg0: i32) -> (i32, i32, i32) {
    %c0_i32 = arith.constant 0 : i32
    %c0_i32_0 = arith.constant 0 : i32
    %c0_i32_1 = arith.constant 0 : i32
    %c0_i32_2 = arith.constant 0 : i32
    return %c0_i32, %c0_i32_0, %c0_i32_1 : i32, i32, i32
  }
  func.func @transform_6(%arg0: i32) -> (i32, i32, i32) {
    %c0_i32 = arith.constant 0 : i32
    %c0_i32_0 = arith.constant 0 : i32
    %c0_i32_1 = arith.constant 0 : i32
    %c0_i32_2 = arith.constant 0 : i32
    return %c0_i32, %c0_i32_0, %c0_i32_1 : i32, i32, i32
  }
  func.func @transform_7(%arg0: i32) -> (i32, i32, i32) {
    %c0_i32 = arith.constant 0 : i32
    %c0_i32_0 = arith.constant 0 : i32
    %c0_i32_1 = arith.constant 0 : i32
    %c0_i32_2 = arith.constant 0 : i32
    return %c0_i32, %c0_i32_0, %c0_i32_1 : i32, i32, i32
  }
  func.func @transform_8(%arg0: i32) -> (i32, i32, i32) {
    %c0_i32 = arith.constant 0 : i32
    %c0_i32_0 = arith.constant 0 : i32
    %c0_i32_1 = arith.constant 0 : i32
    %c0_i32_2 = arith.constant 0 : i32
    return %c0_i32, %c0_i32_0, %c0_i32_1 : i32, i32, i32
  }
  func.func @transform_9(%arg0: i32) -> (i32, i32, i32) {
    %c0_i32 = arith.constant 0 : i32
    %c0_i32_0 = arith.constant 0 : i32
    %c0_i32_1 = arith.constant 0 : i32
    %c0_i32_2 = arith.constant 0 : i32
    return %c0_i32, %c0_i32_0, %c0_i32_1 : i32, i32, i32
  }
  func.func @transform_10(%arg0: i32) -> (i32, i32) {
    %c0_i32 = arith.constant 0 : i32
    %c0_i32_0 = arith.constant 0 : i32
    %c0_i32_1 = arith.constant 0 : i32
    return %c0_i32, %c0_i32_0 : i32, i32
  }
  func.func @transform_11(%arg0: i32) -> (i32, i32) {
    %c0_i32 = arith.constant 0 : i32
    %c0_i32_0 = arith.constant 0 : i32
    %c0_i32_1 = arith.constant 0 : i32
    return %c0_i32, %c0_i32_0 : i32, i32
  }
  func.func @transform_12(%arg0: i32) -> (i32, i32) {
    %c0_i32 = arith.constant 0 : i32
    %c0_i32_0 = arith.constant 0 : i32
    %c0_i32_1 = arith.constant 0 : i32
    return %c0_i32, %c0_i32_0 : i32, i32
  }
  func.func @transform_13(%arg0: i32) -> (i32, i32) {
    %c0_i32 = arith.constant 0 : i32
    %c0_i32_0 = arith.constant 0 : i32
    %c0_i32_1 = arith.constant 0 : i32
    return %c0_i32, %c0_i32_0 : i32, i32
  }
  func.func @transform_14(%arg0: i32) -> (i32, i32) {
    %c0_i32 = arith.constant 0 : i32
    %c0_i32_0 = arith.constant 0 : i32
    %c0_i32_1 = arith.constant 0 : i32
    return %c0_i32, %c0_i32_0 : i32, i32
  }
  func.func @transform_15(%arg0: i32) -> (i32, i32) {
    %c0_i32 = arith.constant 0 : i32
    %c0_i32_0 = arith.constant 0 : i32
    %c0_i32_1 = arith.constant 0 : i32
    return %c0_i32, %c0_i32_0 : i32, i32
  }
  func.func @transform_16(%arg0: i32) -> (i32, i32, i32) {
    %c0_i32 = arith.constant 0 : i32
    %c0_i32_0 = arith.constant 0 : i32
    %c0_i32_1 = arith.constant 0 : i32
    return %arg0, %c0_i32, %c0_i32_0 : i32, i32, i32
  }
}

</mosaic_0001>

<bundles_post_ra>
// kernel: myxlstm_forward.1
= control target key start
LH: loop header
LB: loop body
LE: loop exit
PB: predicated region body
PF: predicated region fallthrough
CT: control target
= control target key end

     0   :  { %s3831_s0 = inlined_call_operand.vmem [shape: f32[2,17,24], index: 0, kind: input, shape index: {}]   ;;  %s3832_s1 = inlined_call_operand.vmem [shape: f32[1,32], index: 1, kind: input, shape index: {}]   ;;  %s3833_s2 = inlined_call_operand.vmem [shape: f32[24,32], index: 2, kind: input, shape index: {}]   ;;  %s3834_s3 = inlined_call_operand.vmem [shape: f32[1,32], index: 3, kind: input, shape index: {}]   ;;  %s3835_s4 = inlined_call_operand.vmem [shape: f32[2,1,32], index: 4, kind: input, shape index: {}]   ;;  %s3836_s5 = inlined_call_operand.vmem [shape: f32[2,1,32], index: 5, kind: input, shape index: {}]   ;;  %s3837_s6 = inlined_call_operand.vmem [shape: f32[2,32,128], index: 6, kind: input, shape index: {}]   ;;  %s3838_s7 = inlined_call_operand.vmem [shape: f32[2,1,128], index: 7, kind: input, shape index: {}]   ;;  %s3839_s8 = inlined_call_operand.vmem [shape: f32[2,32,2], index: 8, kind: input, shape index: {}]   ;;  %s3840_s9 = inlined_call_operand.vmem [shape: f32[2,1,2], index: 9, kind: input, shape index: {}]   ;;  %s3841_s10 = inlined_call_operand.vmem [shape: f32[1,32], index: 10, kind: input, shape index: {}]   ;;  %s3842_s11 = inlined_call_operand.vmem [shape: f32[1,32], index: 11, kind: input, shape index: {}]   ;;  %s3843_s12 = inlined_call_operand.vmem [shape: f32[32,16], index: 12, kind: input, shape index: {}]   ;;  %s3844_s13 = inlined_call_operand.vmem [shape: f32[1,16], index: 13, kind: input, shape index: {}]   ;;  %s3845_s14 = inlined_call_operand.vmem [shape: f32[16,5], index: 14, kind: input, shape index: {}]   ;;  %s3846_s15 = inlined_call_operand.vmem [shape: f32[1,5], index: 15, kind: input, shape index: {}]   ;;  %s3847_s16 = inlined_call_operand.hbm [shape: f32[2,1,5], index: 16, kind: output, shape index: {}]  }
   0x1   :  { %3850 = sst [smem:[#allocation7_spill]] %s3831_s0 }
   0x2   :  { %3851 = sst [smem:[#allocation8_spill]] %s3832_s1 }
   0x3   :  { %3852 = sst [smem:[#allocation9_spill]] %s3833_s2 }
   0x4   :  { %3853 = sst [smem:[#allocation10_spill]] %s3834_s3 }
   0x5   :  { %21 = vsyncpa [#allocation3], 0 }
   0x6   :  { %23 = vsyncpa [#allocation3 + $0x1], 0  ;;  %s3234_s21 = smov 0   ;;  %s3236_s22 = smov 0  }
   0x7   :  { %s3238_s23 = smov 0   ;;  %s3240_s24 = smov 0  }
   0x8 LB: > { %3854 = sst [smem:[#allocation5_spill]] %s3133_s23  ;;  %s3255_s25 = sadd.s32 4294967295, %s3137_s24   ;;  %s3137_s24 = sphi %s3240_s24, %s3869_s24   ;;  %s3133_s23 = sphi %s3238_s23, %s3866_s23   ;;  %s3129_s22 = sphi %s3236_s22, %s3868_s22   ;;  %s3125_s21 = sphi %s3234_s21, %s3867_s21  }
   0x9   : > { %s2466_s26 = sadd.s32 4294967294, %s3137_s24   ;;  %s3259_s27 = sadd.s32 1, %s3137_s24  }
   0xa   : > { %s377_s28 = sadd.s32 1, %s3133_s23  ;;  %s374_s29 = ssub.s32 %s3137_s24, %s3259_s27 }
   0xb   : > { %p387_p0 = scmp.ne.s32.totalorder %s3133_s23, %s3129_s22  ;;  %p375_p1 = scmp.eq.s32.totalorder %s374_s29, 0 }
   0xc   : > { %p388_p2 = scmp.eq.s32.totalorder %s3255_s25, 1  ;;  %p393_p3 = scmp.ne.s32.totalorder %s3129_s22, %s3125_s21 }
   0xd   : > { %p394_p4 = scmp.eq.s32.totalorder %s2466_s26, 1  ;;  %p2469_p7 = scmp.ge.s32.totalorder %s3137_s24, 1 }
   0xe   : > { %s3270_s30 = scalar_select %p375_p1, %s3133_s23, %s377_s28  }
   0xf   : > { %p3272_p5 = por %p388_p2, %p387_p0  ;;  %p3276_p6 = por %p394_p4, %p393_p3 }
  0x10   : > { %3855 = sst [smem:[#allocation6_spill]] %s3270_s30  ;;  %p465_p8 = scmp.lt.s32.totalorder %s3137_s24, 3 }
  0x12   : > { %p466_p9 = pnand %p2469_p7, %p465_p8 }
  0x13   : > { %s3858_s2 = sld [smem:[#allocation9_spill]] (!%p466_p9)  ;;  %v3139_v2 = vmov (!%p466_p9), 0.0|0.0   ;;  %vm3140_vm0 = vmmov (!%p466_p9), 0   ;;  %v3141_v4 = vmov (!%p466_p9), 0.0   ;;  %p514_p10 = scmp.lt.s32.totalorder (!%p466_p9), %s3255_s25, 1  ;;  %vm532_vm1 = vcmask (!%p466_p9), 195584  }
  0x14   : > { %469 = sbr.rel (%p466_p9) target bundleno = 4756 (0x1294), region = 84  ;;  %2850 = vmatprep.subr.bf16.mxu0 (!%p466_p9), %v3139_v2  ;;  %2647 = vmatprep.mubr.msk.f32.mxu0 (!%p466_p9), %vm3140_vm0, %v3141_v4  ;;  %s3859_s30 = sld [smem:[#allocation7_spill]] (!%p466_p9)  ;;  %v622_v9 = vlaneseq (!%p466_p9)  ;;  %vm665_vm2 = vcmask (!%p466_p9), 261120   ;;  %vm672_vm4 = vcmask (!%p466_p9), 253952   ;;  %v727_v42 = vld [vmem:[%s3837_s6] sm:$0xff] (!%p466_p9)  ;;  %v728_v43 = vld [vmem:[%s3837_s6 + $0x8] sm:$0xff] (!%p466_p9) }
  0x15   : > { %2853 = vmatprep.subr.bf16.mxu1 (!%p466_p9), %v3139_v2  ;;  %2664 = vmatprep.mubr.msk.f32.mxu1 (!%p466_p9), %vm3140_vm0, %v3141_v4  ;;  %s3860_s3 = sld [smem:[#allocation10_spill]] (!%p466_p9)  ;;  %s3861_s1 = sld [smem:[#allocation8_spill]] (!%p466_p9)  ;;  %v827_v44 = vld [vmem:[%s3839_s8] sm:$0xff] (!%p466_p9)  ;;  %v2854_v45 = vpack.c.bf16 (!%p466_p9), %v728_v43, %v727_v42  ;;  %v828_v46 = vld [vmem:[%s3839_s8 + $0x8] sm:$0xff] (!%p466_p9)  ;;  %v729_v47 = vld [vmem:[%s3837_s6 + $0x10] sm:$0xff] (!%p466_p9)  ;;  %vm969_vm6 = vcmask (!%p466_p9), 1040384  }
  0x16   : > { %v3311_v10 = vshrl.u32 (!%p466_p9), %v622_v9, 7  ;;  %v730_v48 = vld [vmem:[%s3837_s6 + $0x18] sm:$0xff] (!%p466_p9)  ;;  %v2860_v49 = vpack.c.bf16 (!%p466_p9), %v828_v46, %v827_v44  ;;  %v829_v50 = vld [vmem:[%s3839_s8 + $0x10] sm:$0xff] (!%p466_p9)  ;;  %s3142_s18 = smov (!%p466_p9), 127   ;;  %vm959_vm7 = vcmask (!%p466_p9), 138240   ;;  %s3144_s26 = smov (!%p466_p9), 96   ;;  %vm3501_vm13 = vmpackc.low (!%p466_p9), %vm665_vm2, %vm665_vm2 }
  0x17   : > { %v830_v51 = vld [vmem:[%s3839_s8 + $0x18] sm:$0xff] (!%p466_p9)  ;;  %2855 = vmatpush3.bf16.msra.mxu1 (!%p466_p9), %v2854_v45  ;;  %v2857_v52 = vpack.c.bf16 (!%p466_p9), %v730_v48, %v729_v47  ;;  %vm1180_vm14 = vcmask (!%p466_p9), 131072   ;;  %vm2322_vm15 = vcmask (!%p466_p9), 130048  }
  0x18   : > { %v3317_v13 = vadd.s32 (!%p466_p9), 8, %v3311_v10  ;;  %2856 = vmatprep.subr.bf16.mxu1 (!%p466_p9), %v3139_v2  ;;  %v2863_v53 = vpack.c.bf16 (!%p466_p9), %v830_v51, %v829_v50 }
  0x19   : > { %v522_v0 = vld [vmem:[%s3858_s2] sm:$0xff] (!%p466_p9)  ;;  %v523_v1 = vld [vmem:[%s3858_s2 + $0x8] sm:$0xff] (!%p466_p9)  ;;  %v524_v5 = vld [vmem:[%s3858_s2 + $0x10] sm:$0xff] (!%p466_p9) }
  0x1a   : > { %v2851_v3 = vpack.c.bf16 (!%p466_p9), %v523_v1, %v522_v0  ;;  %vm627_vm3 = vcmp.eq.s32.totalorder (!%p466_p9), %v3317_v13, 8  ;;  %v2482_v0 = vld [vmem:[%s3835_s4] ss:$0 sm:$0xff] (!%p466_p9) }
  0x1b   : > { %s515_s28 = scalar_select %p514_p10, %s3255_s25, 1  ;;  %v2471_v11 = vld [vmem:[%s3860_s3] ss:$0 sm:$0xff]  ;;  %2858 = vmatpush3.bf16.msra.mxu1 %v2857_v52 }
  0x1c   : > { %2852 = vmatpush3.bf16.msra.mxu0 %v2851_v3  ;;  %v2475_v18 = vld [vmem:[%s3861_s1] ss:$0 sm:$0xff]  ;;  %2865 = vmatprep.subr.bf16.mxu1 %v3139_v2  ;;  %s3849_s1 = smov 32  }
  0x1d   : > { %2645 = vmatprep.subr.mxu0 %v3141_v4  ;;  %s2912_s19 = smul.u32 24, %s515_s28  ;;  %v2483_v3 = vld [vmem:[%s3836_s5] ss:$0 sm:$0xff] }
  0x1f   : > { %s518_s23 = scalar_lea.vmem %s3859_s30, %s2912_s19  ;;  %s3146_s30 = smov 64  }
  0x20   : > { %2646 = vmatpush3.msra.mxu0 %v524_v5  ;;  %v519_v6 = vld [vmem:[%s518_s23] sm:$0xff]  ;;  %v520_v7 = vld [vmem:[%s518_s23 + $0x8] sm:$0xff]  ;;  %v521_v8 = vld [vmem:[%s518_s23 + $0x10] sm:$0x1]  ;;  %s512_s19 = sand.u32 1, %s3129_s22  }
  0x21   : > { %2859 = vmatprep.subr.bf16.mxu0 %v3139_v2  ;;  %2648 = vmatmul.mubr.msk.f32.vlgmr.msra.gmra.mrb[0].mxu0 %vm532_vm1, %v519_v6  ;;  %s2399_s23 = scalar_lea.sflag [#allocation3], %s512_s19 }
  0x22   : > { %2650 = vmatprep.mubr.msk.f32.mxu0 %vm3140_vm0, %v3141_v4  ;;  %2861 = vmatpush3.bf16.msra.mxu0 %v2860_v49 }
  0x23   : > { %2862 = vmatprep.subr.bf16.mxu0 %v3139_v2 }
  0x25   : > { %2651 = vmatmul.mubr.msk.f32.gmra.mrb[2].mxu0 %vm532_vm1, %v520_v7 }
  0x26   : > { %2653 = vmatprep.mubr.msk.f32.mxu0 %vm3140_vm0, %v3141_v4  ;;  %2864 = vmatpush3.bf16.msra.mxu0 %v2863_v53 }
  0x27   : > { %2868 = vmatprep.subr.bf16.mxu0 %v3139_v2 }
  0x29   : > { %2654 = vmatmul.mubr.msk.f32.gmra.mrb[4].mxu0 %vm532_vm1, %v521_v8 }
  0x2a   : > { %2681 = vmatprep.mubr.msk.f32.mxu0 %vm3140_vm0, %v3141_v4 }
  0xf4   : > { %v608_v12 = vpop.f32.mrb[0].mxu0 }
  0xf5   : > { %v3319_v14 = vadd.f32 %v2471_v11, %v608_v12  ;;  %v2649_v15 = vpop.f32.mrb[1].mxu0 }
  0xf7   : > { %v666_v16 = vsel %vm665_vm2, %v3319_v14, 0.0 }
  0xf8   : > { %667 = vadd.xlane.f32.xlu0 %v666_v16  ;;  %v613_v17 = vpop.f32.mrb[2].mxu0 }
  0xf9   : > { %v614_v19 = vadd.f32 %v2471_v11, %v613_v17  ;;  %v2652_v20 = vpop.f32.mrb[3].mxu0 }
  0xfb   : > { %v3327_v21 = vsel %vm627_vm3, %v2475_v18, %v614_v19  ;;  %v2488_v19 = vld [vmem:[%s3840_s9] ss:$0 sm:$0xff] }
  0xfc   : > { %v618_v22 = vpop.f32.mrb[4].mxu0  ;;  %v669_v23 = vsel %vm665_vm2, %v3327_v21, 0.0 }
  0xfd   : > { %v3331_v24 = vadd.f32 %v2471_v11, %v618_v22  ;;  %670 = vadd.xlane.f32.xlu0 %v669_v23  ;;  %v2655_v25 = vpop.f32.mrb[5].mxu0 }
  0xff   : > { %v673_v26 = vsel %vm672_vm4, %v3331_v24, 0.0 }
 0x100   : > { %674 = vadd.xlane.f32.xlu1 %v673_v26 }
 0x185   : > { %v668_v27 = vpop.xlane.xlu0 %667 }
 0x186   : > { %v677_v28 = vmul.f32 0.03125, %v668_v27 }
 0x188   : > { %v680_v29 = vsub.f32 %v3319_v14, %v677_v28 }
 0x18a   : > { %v671_v30 = vpop.xlane.xlu0 %670  ;;  %v683_v31 = vmul.f32 %v680_v29, %v680_v29 }
 0x18b   : > { %v678_v32 = vmul.f32 0.03125, %v671_v30 }
 0x18c   : > { %v686_v33 = vsel %vm665_vm2, %v683_v31, 0.0 }
 0x18d   : > { %v681_v34 = vsub.f32 %v3327_v21, %v678_v32  ;;  %687 = vadd.xlane.f32.xlu1 %v686_v33  ;;  %v675_v35 = vpop.xlane.xlu1 %674 }
 0x18e   : > { %v679_v36 = vmul.f32 0.03125, %v675_v35 }
 0x18f   : > { %v684_v37 = vmul.f32 %v681_v34, %v681_v34 }
 0x190   : > { %v682_v38 = vsub.f32 %v3331_v24, %v679_v36 }
 0x191   : > { %v689_v39 = vsel %vm665_vm2, %v684_v37, 0.0 }
 0x192   : > { %690 = vadd.xlane.f32.xlu0 %v689_v39  ;;  %v685_v40 = vmul.f32 %v682_v38, %v682_v38 }
 0x194   : > { %v692_v41 = vsel %vm672_vm4, %v685_v40, 0.0 }
 0x195   : > { %693 = vadd.xlane.f32.xlu1 %v692_v41 }
 0x21a   : > { %v688_v54 = vpop.xlane.xlu1 %687 }
 0x21b   : > { %v695_v55 = vmul.f32 0.03125, %v688_v54 }
 0x21d   : > { %v698_v56 = vadd.f32 1e-05, %v695_v55 }
 0x21f   : > { %2993 = vrsqrt.f32 %v698_v56  ;;  %v691_v57 = vpop.xlane.xlu0 %690 }
 0x220   : > { %v696_v58 = vmul.f32 0.03125, %v691_v57 }
 0x222   : > { %v699_v59 = vadd.f32 1e-05, %v696_v58  ;;  %v694_v60 = vpop.xlane.xlu1 %693 }
 0x223   : > { %v697_v61 = vmul.f32 0.03125, %v694_v60 }
 0x224   : > { %2995 = vrsqrt.f32 %v699_v59 }
 0x225   : > { %v700_v62 = vadd.f32 1e-05, %v697_v61 }
 0x227   : > { %2997 = vrsqrt.f32 %v700_v62 }
 0x229   : > { %v2994_v63 = vpop.eup %2993 }
 0x22a   : > { %v704_v1 = vmul.f32 %v2994_v63, %v680_v29 }
 0x22c   : > { %v714_v5 = vmul.f32 %v2482_v0, %v704_v1  ;;  %v3417_v1 = vand.u32 127, %v622_v9 }
 0x22e   : > { %v2996_v6 = vpop.eup %2995  ;;  %v724_v7 = vadd.f32 %v2483_v3, %v714_v5  ;;  %vm647_vm5 = vcmp.le.s32.totalorder %v3417_v1, %v3311_v10  ;;  %vm648_vm8 = vcmp.le.s32.totalorder %v3417_v1, %v3317_v13  ;;  %vm656_vm10 = vcmp.eq.s32.totalorder %v3417_v1, %v3311_v10 }
 0x22f   : > { %v705_v8 = vmul.f32 %v2996_v6, %v681_v34  ;;  %vm657_vm11 = vcmp.eq.s32.totalorder %v3417_v1, %v3317_v13 }
 0x230   : > { %2665 = vmatmul.mubr.msk.f32.vlgmr.msra.gmra.mrb[0].mxu1 %vm665_vm2, %v724_v7  ;;  %2682 = vmatmul.mubr.msk.f32.vlgmr.msra.gmra.mrb[6].mxu0 %vm665_vm2, %v724_v7 }
 0x231   : > { %v2998_v11 = vpop.eup %2997  ;;  %2667 = vmatprep.mubr.msk.f32.mxu1 %vm3140_vm0, %v3141_v4  ;;  %2684 = vmatprep.mubr.msk.f32.mxu0 %vm3140_vm0, %v3141_v4  ;;  %v715_v12 = vmul.f32 %v2482_v0, %v705_v8  ;;  %v3426_v8 = vsel %vm647_vm5, 1.0, %v3141_v4 }
 0x232   : > { %v706_v15 = vmul.f32 %v2998_v11, %v682_v38  ;;  %v3431_v11 = vadd.s32 16, %v3311_v10 }
 0x233   : > { %v725_v16 = vadd.f32 %v2483_v3, %v715_v12  ;;  %v3443_v12 = vsel %vm648_vm8, 1.0, %v3141_v4 }
 0x234   : > { %v716_v17 = vmul.f32 %v2482_v0, %v706_v15  ;;  %vm649_vm9 = vcmp.le.s32.totalorder %v3417_v1, %v3431_v11  ;;  %vm658_vm12 = vcmp.eq.s32.totalorder %v3417_v1, %v3431_v11 }
 0x235   : > { %2668 = vmatmul.mubr.msk.f32.gmra.mrb[2].mxu1 %vm665_vm2, %v725_v16  ;;  %2685 = vmatmul.mubr.msk.f32.gmra.mrb[8].mxu0 %vm665_vm2, %v725_v16  ;;  %v3455_v15 = vsel %vm649_vm9, 1.0, %v3141_v4  ;;  %v3143_v16 = vmov 0  }
 0x236   : > { %2670 = vmatprep.mubr.msk.f32.mxu1 %vm3140_vm0, %v3141_v4  ;;  %2687 = vmatprep.mubr.msk.f32.mxu0 %vm3140_vm0, %v3141_v4  ;;  %v726_v18 = vadd.f32 %v2483_v3, %v716_v17  ;;  %v2484_v17 = vld [vmem:[%s3838_s7] ss:$0 sm:$0xff] }
 0x237   : > { %2966 = vset.pattern.permute.xlu1 %v3143_v16  ;;  %2967 = vset.pattern.permute.xlu0 %v3143_v16 }
 0x239   : > { %2671 = vmatmul.mubr.msk.f32.gmra.mrb[4].mxu1 %vm665_vm2, %v726_v18  ;;  %2688 = vmatmul.mubr.msk.f32.gmra.mrb[10].mxu0 %vm665_vm2, %v726_v18 }
 0x23a   : > { %2696 = vmatprep.mubr.msk.f32.mxu1 %vm3140_vm0, %v3141_v4  ;;  %2711 = vmatprep.mubr.msk.f32.mxu0 %vm3140_vm0, %v3141_v4 }
 0x303   : > { %v3396_v20 = vpop.f32.mrb[0].mxu1  ;;  %v904_v22 = vpop.f32.mrb[6].mxu0 }
 0x304   : > { %v3398_v23 = vadd.f32 %v2488_v19, %v904_v22  ;;  %v2666_v25 = vpop.f32.mrb[1].mxu1  ;;  %v2683_v26 = vpop.f32.mrb[7].mxu0 }
 0x305   : > { %v3469_v26 = vadd.f32 %v2484_v17, %v3396_v20 }
 0x306   : > { %v924_v27 = vand.u32 2147483647, %v3398_v23  ;;  %v921_v55 = vmin.f32 %v3398_v23, 0.0 }
 0x308   : > { %v927_v28 = vsub.f32 0.0, %v924_v27  ;;  %v3401_v29 = vpop.f32.mrb[2].mxu1  ;;  %v909_v30 = vpop.f32.mrb[8].mxu0 }
 0x309   : > { %v3403_v31 = vadd.f32 %v2488_v19, %v909_v30  ;;  %v2669_v32 = vpop.f32.mrb[3].mxu1  ;;  %v2686_v33 = vpop.f32.mrb[9].mxu0 }
 0x30a   : > { %v930_v34 = vmul.f32 1.442695, %v927_v28  ;;  %v918_v33 = vmul.f32 0.17677669, %v3469_v26 }
 0x30b   : > { %v925_v35 = vand.u32 2147483647, %v3403_v31  ;;  %v922_v56 = vmin.f32 %v3403_v31, 0.0 }
 0x30c   : > { %2999 = vpow2.f32 %v930_v34  ;;  %v3406_v36 = vpop.f32.mrb[4].mxu1  ;;  %v914_v37 = vpop.f32.mrb[10].mxu0 }
 0x30d   : > { %v928_v38 = vsub.f32 0.0, %v925_v35  ;;  %v3408_v39 = vadd.f32 %v2488_v19, %v914_v37  ;;  %v2672_v40 = vpop.f32.mrb[5].mxu1  ;;  %v2689_v41 = vpop.f32.mrb[11].mxu0  ;;  %v3465_v19 = vadd.f32 %v2484_v17, %v3401_v29  ;;  %v3475_v29 = vadd.f32 %v2484_v17, %v3406_v36 }
 0x30e   : > { %v3486_v36 = vsel %vm656_vm10, 1.0, %v3141_v4 }
 0x30f   : > { %v932_v42 = vmul.f32 1.442695, %v928_v38  ;;  %v926_v43 = vand.u32 2147483647, %v3408_v39  ;;  %v923_v62 = vmin.f32 %v3408_v39, 0.0  ;;  %v3489_v38 = vsel %vm657_vm11, 1.0, %v3141_v4 }
 0x310   : > { %v919_v32 = vmul.f32 0.17677669, %v3465_v19  ;;  %v920_v20 = vmul.f32 0.17677669, %v3475_v29 }
 0x311   : > { %3001 = vpow2.f32 %v932_v42  ;;  %v929_v44 = vsub.f32 0.0, %v926_v43 }
 0x312   : > { %v2968_v37 = vpack.i.bf16 %v919_v32, %v918_v33 }
 0x313   : > { %v934_v45 = vmul.f32 1.442695, %v929_v44  ;;  %v3496_v44 = vsel %vm658_vm12, 1.0, %v3141_v4 }
 0x315   : > { %3003 = vpow2.f32 %v934_v45 }
 0x316   : > { %v3000_v46 = vpop.eup %2999 }
 0x317   : > { %v936_v47 = vadd.f32 1.0, %v3000_v46 }
 0x319   : > { %3005 = vlog2.f32 %v936_v47 }
 0x31b   : > { %v3002_v48 = vpop.eup %3001 }
 0x31c   : > { %v937_v49 = vadd.f32 1.0, %v3002_v48 }
 0x31e   : > { %3007 = vlog2.f32 %v937_v49 }
 0x31f   : > { %v3004_v50 = vpop.eup %3003 }
 0x320   : > { %v938_v51 = vadd.f32 1.0, %v3004_v50 }
 0x322   : > { %3009 = vlog2.f32 %v938_v51  ;;  %v3145_v51 = vmov 1.0  }
 0x323   : > { %v3006_v52 = vpop.eup %3005 }
 0x324   : > { %v940_v53 = vmul.f32 0.6931472, %v3006_v52 }
 0x326   : > { %v945_v58 = vsub.f32 %v921_v55, %v940_v53 }
 0x328   : > { %v3008_v54 = vpop.eup %3007 }
 0x329   : > { %v942_v57 = vmul.f32 0.6931472, %v3008_v54  ;;  %v1166_v54 = vsub.s32 0, %v3311_v10 }
 0x32b   : > { %v946_v59 = vsub.f32 %v922_v56, %v942_v57 }
 0x32c   : > { %v3010_v60 = vpop.eup %3009 }
 0x32d   : > { %v2961_v61 = vpack.i.bf16 %v946_v59, %v945_v58  ;;  %v944_v63 = vmul.f32 0.6931472, %v3010_v60 }
 0x32f   : > { %2962 = vrot.lane.b32.xlu0 %v2961_v61, %s3142_s18  ;;  %v947_v0 = vsub.f32 %v923_v62, %v944_v63 }
 0x331   : > { %955 = vrot.lane.b32.xlu1 %v947_v0, %s3142_s18 }
 0x3a1   : > { %v2963_v3 = vpop.permute.xlu0 %2962 }
 0x3a2   : > { %v2965_v5 = vunpack.i.h.bf16 %v2963_v3  ;;  %v2964_v6 = vunpack.i.l.bf16 %v2963_v3 }
 0x3a3   : > { %v956_v9 = vpop.permute.xlu1 %955 }
 0x3a4   : > { %v2866_v7 = vpack.c.bf16 %v2965_v5, %v2964_v6 }
 0x3a6   : > { %2867 = vmatpush3.bf16.msra.mxu1 %v2866_v7 }
 0x3a7   : > { %2694 = vmatprep.subr.mxu1 %v3141_v4 }
 0x3aa   : > { %2695 = vmatpush3.msk.msra.mxu1 %vm969_vm6, %v956_v9 }
 0x3ab   : > { %2697 = vmatmul.mubr.msk.f32.vlgmr.msra.gmra.mrb[6].mxu1 %vm959_vm7, %v3426_v8  ;;  %2871 = vmatprep.subr.bf16.mxu1 %v3139_v2 }
 0x3ac   : > { %2699 = vmatprep.mubr.msk.f32.mxu1 %vm3140_vm0, %v3141_v4 }
 0x3af   : > { %2700 = vmatmul.mubr.msk.f32.gmra.mrb[8].mxu1 %vm959_vm7, %v3443_v12 }
 0x3b0   : > { %2702 = vmatprep.mubr.msk.f32.mxu1 %vm3140_vm0, %v3141_v4 }
 0x3b3   : > { %2703 = vmatmul.mubr.msk.f32.gmra.mrb[10].mxu1 %vm959_vm7, %v3455_v15 }
 0x3b4   : > { %2720 = vmatprep.mubr.msk.f32.mxu1 %vm3140_vm0, %v3141_v4 }
 0x47e   : > { %v1038_v18 = vpop.f32.mrb[6].mxu1 }
 0x47f   : > { %v1052_v22 = vsub.f32 %v3398_v23, %v1038_v18  ;;  %v2698_v25 = vpop.f32.mrb[7].mxu1 }
 0x481   : > { %1057 = vperm.xlu1 %2966, %v1052_v22  }
 0x482   : > { %v1043_v27 = vpop.f32.mrb[8].mxu1 }
 0x483   : > { %v1053_v28 = vsub.f32 %v3403_v31, %v1043_v27  ;;  %v2701_v30 = vpop.f32.mrb[9].mxu1 }
 0x485   : > { %1062 = vperm.xlu1 %2966, %v1053_v28  }
 0x486   : > { %v1048_v34 = vpop.f32.mrb[10].mxu1 }
 0x487   : > { %v1054_v23 = vsub.f32 %v3408_v39, %v1048_v34  ;;  %v2704_v35 = vpop.f32.mrb[11].mxu1 }
 0x489   : > { %2969 = vrot.lane.b32.xlu1 %v2968_v37, %s3144_s26  ;;  %1067 = vperm.xlu0 %2967, %v1054_v23  }
 0x48d   : > { %1200 = vrot.lane.b32.xlu1 %v920_v20, %s3144_s26  ;;  %1151 = vperm.xlu0 %2967, %v1038_v18  }
 0x491   : > { %1156 = vperm.xlu1 %2966, %v1043_v27   ;;  %1161 = vperm.xlu0 %2967, %v1048_v34   ;;  %v2973_v27 = vpack.i.bf16 %v3465_v19, %v3469_v26 }
 0x500   : > { %v1058_v31 = vpop.permute.xlu1 %1057 }
 0x501   : > { %v1070_v40 = vmul.f32 %v3486_v36, %v1058_v31 }
 0x504   : > { %v1063_v39 = vpop.permute.xlu1 %1062 }
 0x505   : > { %v1071_v41 = vmul.f32 %v3489_v38, %v1063_v39 }
 0x507   : > { %v2869_v42 = vpack.c.bf16 %v1071_v41, %v1070_v40 }
 0x508   : > { %v2970_v43 = vpop.permute.xlu1 %2969  ;;  %v1068_v45 = vpop.permute.xlu0 %1067 }
 0x509   : > { %v2972_v46 = vunpack.i.h.bf16 %v2970_v43  ;;  %v2971_v47 = vunpack.i.l.bf16 %v2970_v43  ;;  %2870 = vmatpush3.bf16.msra.mxu0 %v2869_v42  ;;  %v1072_v50 = vmul.f32 %v3496_v44, %v1068_v45 }
 0x50a   : > { %2709 = vmatprep.subr.mxu0 %v3141_v4 }
 0x50b   : > { %v2872_v49 = vpack.c.bf16 %v2972_v46, %v2971_v47 }
 0x50c   : > { %v1201_v52 = vpop.permute.xlu1 %1200  ;;  %v1152_v53 = vpop.permute.xlu0 %1151 }
 0x50d   : > { %2710 = vmatpush3.msk.msra.mxu0 %vm969_vm6, %v1072_v50  ;;  %2874 = vmatpush3.bf16.xpose.msk.msra.mxu1 %vm3501_vm13, %v2872_v49 }
 0x50e   : > { %2712 = vmatmul.mubr.msk.f32.vlgmr.msra.gmra.mrb[12].mxu0 %vm959_vm7, %v3145_v51  ;;  %2718 = vmatprep.subr.mxu1 %v3141_v4 }
 0x50f   : > { %2875 = vmatprep.subr.bf16.mxu0 %v3139_v2  ;;  %2735 = vmatprep.mubr.msk.f32.mxu0 %vm3140_vm0, %v3141_v4 }
 0x510   : > { %v1157_v58 = vpop.permute.xlu1 %1156  ;;  %v1162_v59 = vpop.permute.xlu0 %1161 }
 0x515   : > { %2719 = vmatpush3.xpose.msk.msra.mxu1 %vm665_vm2, %v1201_v52 }
 0x516   : > { %2878 = vmatprep.subr.bf16.mxu1 %v3139_v2 }
 0x518   : > { %2721 = vmatmul.mubr.msk.f32.vlgmr.msra.gmra.mrb[12].mxu1 %vm665_vm2, %v3469_v26 }
 0x519   : > { %2723 = vmatprep.mubr.msk.f32.mxu1 %vm3140_vm0, %v3141_v4 }
 0x51c   : > { %2724 = vmatmul.mubr.msk.f32.gmra.mrb[14].mxu1 %vm665_vm2, %v3465_v19 }
 0x51d   : > { %2726 = vmatprep.mubr.msk.f32.mxu1 %vm3140_vm0, %v3141_v4 }
 0x520   : > { %2727 = vmatmul.mubr.msk.f32.gmra.mrb[16].mxu1 %vm665_vm2, %v3475_v29 }
 0x521   : > { %2752 = vmatprep.mubr.msk.f32.mxu1 %vm3140_vm0, %v3141_v4 }
 0x5e1   : > { %v1145_v55 = vpop.f32.mrb[12].mxu0 }
 0x5e2   : > { %v1167_v56 = vrot.slane %v1145_v55, %v1166_v54  ;;  %v2713_v57 = vpop.f32.mrb[13].mxu0 }
 0x5e4   : > { %v1169_v60 = vadd.f32 %v1167_v56, %v1157_v58  ;;  %v1168_v61 = vadd.f32 %v1167_v56, %v1152_v53  ;;  %v1170_v62 = vadd.f32 %v1167_v56, %v1162_v59 }
 0x5e6   : > { %v1172_v63 = vsel %vm648_vm8, %v1169_v60, -1e+30  ;;  %v1171_v0 = vsel %vm647_vm5, %v1168_v61, -1e+30  ;;  %v1173_v6 = vsel %vm649_vm9, %v1170_v62, -1e+30 }
 0x5e7   : > { %v1177_v3 = vsel %vm959_vm7, %v1172_v63, -inf  ;;  %v1174_v5 = vsel %vm959_vm7, %v1171_v0, -inf  ;;  %v1181_v9 = vsel %vm1180_vm14, %v1173_v6, -inf }
 0x5e8   : > { %1178 = vmax.xlane.f32.xlu0 %v1177_v3  ;;  %1175 = vmax.xlane.f32.xlu1 %v1174_v5 }
 0x5eb   : > { %v1283_v7 = vpop.f32.mrb[12].mxu1 }
 0x5ec   : > { %v2722_v16 = vpop.f32.mrb[13].mxu1  ;;  %1182 = vmax.xlane.f32.xlu0 %v1181_v9 }
 0x5ef   : > { %v1288_v17 = vpop.f32.mrb[14].mxu1 }
 0x5f0   : > { %v2725_v18 = vpop.f32.mrb[15].mxu1 }
 0x5f3   : > { %v1293_v22 = vpop.f32.mrb[16].mxu1 }
 0x5f4   : > { %v2728_v25 = vpop.f32.mrb[17].mxu1 }
 0x5f9   : > { %1328 = vrot.lane.b32.xlu1 %v3475_v29, %s3146_s30 }
 0x602   : > { %2974 = vrot.lane.b32.xlu0 %v2973_v27, %s3146_s30 }
 0x675   : > { %v1179_v28 = vpop.xlane.xlu0 %1178  ;;  %v1176_v30 = vpop.xlane.xlu1 %1175 }
 0x676   : > { %v1185_v32 = vsub.f32 %v1172_v63, %v1179_v28  ;;  %v1184_v33 = vsub.f32 %v1171_v0, %v1176_v30  ;;  %v1312_v56 = vsub.f32 0.0, %v1176_v30  ;;  %v1313_v57 = vsub.f32 0.0, %v1179_v28 }
 0x678   : > { %v1189_v34 = vmul.f32 1.442695, %v1185_v32  ;;  %v1187_v23 = vmul.f32 1.442695, %v1184_v33  ;;  %v1315_v58 = vmul.f32 1.442695, %v1312_v56 }
 0x679   : > { %v1183_v35 = vpop.xlane.xlu0 %1182  ;;  %v1329_v43 = vpop.permute.xlu1 %1328  ;;  %v1317_v59 = vmul.f32 1.442695, %v1313_v57 }
 0x67a   : > { %3011 = vpow2.f32 %v1189_v34  ;;  %v1186_v37 = vsub.f32 %v1173_v6, %v1183_v35  ;;  %v1314_v60 = vsub.f32 0.0, %v1183_v35 }
 0x67b   : > { %3013 = vpow2.f32 %v1187_v23 }
 0x67c   : > { %v1191_v20 = vmul.f32 1.442695, %v1186_v37  ;;  %v1319_v61 = vmul.f32 1.442695, %v1314_v60 }
 0x67d   : > { %v2975_v31 = vpop.permute.xlu0 %2974 }
 0x67e   : > { %3015 = vpow2.f32 %v1191_v20  ;;  %v2977_v39 = vunpack.i.h.bf16 %v2975_v31  ;;  %v2976_v40 = vunpack.i.l.bf16 %v2975_v31 }
 0x67f   : > { %3017 = vpow2.f32 %v1315_v58 }
 0x680   : > { %v2876_v41 = vpack.c.bf16 %v2977_v39, %v2976_v40  ;;  %3019 = vpow2.f32 %v1317_v59  ;;  %v2508_v39 = vmul.f32 -1.442695, %v3469_v26  ;;  %v2509_v40 = vmul.f32 -1.442695, %v3465_v19 }
 0x681   : > { %3021 = vpow2.f32 %v1319_v61 }
 0x682   : > { %2877 = vmatpush3.bf16.msra.mxu0 %v2876_v41  ;;  %v2510_v41 = vmul.f32 -1.442695, %v3475_v29 }
 0x683   : > { %2733 = vmatprep.subr.mxu0 %v3141_v4 }
 0x684   : > { %v3012_v42 = vpop.eup %3011 }
 0x685   : > { %v1298_v45 = vmul.f32 %v3012_v42, %v1288_v17  ;;  %v3014_v46 = vpop.eup %3013 }
 0x686   : > { %2734 = vmatpush3.msk.msra.mxu0 %vm969_vm6, %v1329_v43  ;;  %v1297_v47 = vmul.f32 %v3014_v46, %v1283_v7 }
 0x687   : > { %v1303_v49 = vsel %vm959_vm7, %v1298_v45, 0.0  ;;  %2884 = vmatprep.subr.bf16.mxu0 %v3139_v2 }
 0x688   : > { %v3016_v50 = vpop.eup %3015  ;;  %1304 = vadd.xlane.f32.xlu0 %v1303_v49  ;;  %2736 = vmatmul.mubr.msk.f32.vlgmr.msra.gmra.mrb[14].mxu0 %vm959_vm7, %v1297_v47  ;;  %v1300_v52 = vsel %vm959_vm7, %v1297_v47, 0.0 }
 0x689   : > { %v1299_v53 = vmul.f32 %v3016_v50, %v1293_v22  ;;  %1301 = vadd.xlane.f32.xlu1 %v1300_v52  ;;  %2738 = vmatprep.mubr.msk.f32.mxu0 %vm3140_vm0, %v3141_v4  ;;  %v3018_v3 = vpop.eup %3017 }
 0x68a   : > { %v3020_v9 = vpop.eup %3019 }
 0x68b   : > { %v1306_v55 = vsel %vm1180_vm14, %v1299_v53, 0.0  ;;  %v3022_v18 = vpop.eup %3021 }
 0x68c   : > { %1307 = vadd.xlane.f32.xlu0 %v1306_v55  ;;  %2739 = vmatmul.mubr.msk.f32.gmra.mrb[16].mxu0 %vm959_vm7, %v1298_v45 }
 0x68d   : > { %2741 = vmatprep.mubr.msk.f32.mxu0 %vm3140_vm0, %v3141_v4 }
 0x690   : > { %2742 = vmatmul.mubr.msk.f32.gmra.mrb[18].mxu0 %vm959_vm7, %v1299_v53 }
 0x691   : > { %2769 = vmatprep.mubr.msk.f32.mxu0 %vm3140_vm0, %v3141_v4 }
 0x715   : > { %v1305_v63 = vpop.xlane.xlu0 %1304 }
 0x716   : > { %v1302_v62 = vpop.xlane.xlu1 %1301  ;;  %v1310_v5 = vand.u32 2147483647, %v1305_v63 }
 0x717   : > { %v1309_v0 = vand.u32 2147483647, %v1302_v62 }
 0x718   : > { %v1322_v16 = vmax.f32 %v1310_v5, %v3020_v9 }
 0x719   : > { %v1321_v6 = vmax.f32 %v1309_v0, %v3018_v3  ;;  %v1308_v7 = vpop.xlane.xlu0 %1307 }
 0x71a   : > { %v1311_v17 = vand.u32 2147483647, %v1308_v7 }
 0x71b   : > { %3023 = vrcp.f32 %v1321_v6 }
 0x71c   : > { %3025 = vrcp.f32 %v1322_v16  ;;  %v1323_v22 = vmax.f32 %v1311_v17, %v3022_v18 }
 0x71e   : > { %3027 = vrcp.f32 %v1323_v22 }
 0x71f   : > { %3029 = vpow2.f32 %v2508_v39  ;;  %v2518_v39 = vld [vmem:[%s3837_s6 + $0x38] sm:$0xff] }
 0x720   : > { %3031 = vpow2.f32 %v2509_v40  ;;  %v2526_v40 = vld [vmem:[%s3839_s8 + $0x30] sm:$0xff] }
 0x721   : > { %3033 = vpow2.f32 %v2510_v41 }
 0x725   : > { %v3024_v25 = vpop.eup %3023 }
 0x726   : > { %v3026_v32 = vpop.eup %3025 }
 0x728   : > { %v3028_v35 = vpop.eup %3027 }
 0x729   : > { %v3030_v42 = vpop.eup %3029 }
 0x72a   : > { %v1438_v43 = vadd.f32 1.0, %v3030_v42  ;;  %v3032_v45 = vpop.eup %3031  ;;  %v2527_v42 = vld [vmem:[%s3839_s8 + $0x38] sm:$0xff] }
 0x72b   : > { %v1439_v46 = vadd.f32 1.0, %v3032_v45  ;;  %v3034_v47 = vpop.eup %3033 }
 0x72c   : > { %3035 = vrcp.f32 %v1438_v43  ;;  %v1440_v49 = vadd.f32 1.0, %v3034_v47  ;;  %v2888_v43 = vpack.c.bf16 %v2527_v42, %v2526_v40 }
 0x72d   : > { %3037 = vrcp.f32 %v1439_v46 }
 0x72e   : > { %3039 = vrcp.f32 %v1440_v49 }
 0x736   : > { %v3036_v50 = vpop.eup %3035 }
 0x737   : > { %v3038_v19 = vpop.eup %3037 }
 0x738   : > { %v3040_v29 = vpop.eup %3039 }
 0x75b   : > { %v1409_v27 = vpop.f32.mrb[14].mxu0 }
 0x75c   : > { %v1426_v28 = vmul.f32 %v3024_v25, %v1409_v27  ;;  %v2737_v30 = vpop.f32.mrb[15].mxu0 }
 0x75e   : > { %1450 = vrot.lane.b32.xlu1 %v1426_v28, %s3144_s26 }
 0x75f   : > { %v1414_v33 = vpop.f32.mrb[16].mxu0 }
 0x760   : > { %v1427_v34 = vmul.f32 %v3026_v32, %v1414_v33  ;;  %v2740_v23 = vpop.f32.mrb[17].mxu0  ;;  %v2515_v33 = vld [vmem:[%s3837_s6 + $0x20] sm:$0xff] }
 0x761   : > { %v2524_v23 = vld [vmem:[%s3839_s8 + $0x20] sm:$0xff] }
 0x762   : > { %1452 = vrot.lane.b32.xlu0 %v1427_v34, %s3144_s26  ;;  %v2516_v34 = vld [vmem:[%s3837_s6 + $0x28] sm:$0xff] }
 0x763   : > { %v1419_v37 = vpop.f32.mrb[18].mxu0 }
 0x764   : > { %v1428_v20 = vmul.f32 %v3028_v35, %v1419_v37  ;;  %v2743_v31 = vpop.f32.mrb[19].mxu0  ;;  %v2879_v35 = vpack.c.bf16 %v2516_v34, %v2515_v33  ;;  %v2525_v37 = vld [vmem:[%s3839_s8 + $0x28] sm:$0xff]  ;;  %v2520_v34 = vld [vmem:[%s3838_s7 + $0x1] ss:$0 sm:$0xff] }
 0x765   : > { %v2517_v31 = vld [vmem:[%s3837_s6 + $0x30] sm:$0xff] }
 0x766   : > { %1454 = vrot.lane.b32.xlu1 %v1428_v20, %s3144_s26  ;;  %v2885_v20 = vpack.c.bf16 %v2525_v37, %v2524_v23  ;;  %2880 = vmatpush3.bf16.msra.mxu1 %v2879_v35  ;;  %v2882_v41 = vpack.c.bf16 %v2518_v39, %v2517_v31 }
 0x767   : > { %2881 = vmatprep.subr.bf16.mxu1 %v3139_v2 }
 0x768   : > { %2886 = vmatpush3.bf16.msra.mxu0 %v2885_v20 }
 0x769   : > { %2887 = vmatprep.subr.bf16.mxu0 %v3139_v2 }
 0x76a   : > { %2883 = vmatpush3.bf16.msra.mxu1 %v2882_v41 }
 0x76b   : > { %2890 = vmatprep.subr.bf16.mxu1 %v3139_v2 }
 0x76c   : > { %2889 = vmatpush3.bf16.msra.mxu0 %v2888_v43 }
 0x76d   : > { %2893 = vmatprep.subr.bf16.mxu0 %v3139_v2 }
 0x7d0   : > { %v1451_v52 = vpop.permute.xlu1 %1450 }
 0x7d1   : > { %v1459_v53 = vmul.f32 %v3036_v50, %v1451_v52 }
 0x7d3   : > { %1465 = vrot.lane.b32.xlu1 %v1459_v53, %s3849_s1 }
 0x7d4   : > { %v1453_v26 = vpop.permute.xlu0 %1452 }
 0x7d5   : > { %v1460_v55 = vmul.f32 %v3038_v19, %v1453_v26 }
 0x7d7   : > { %1467 = vrot.lane.b32.xlu1 %v1460_v55, %s3849_s1 }
 0x7d8   : > { %v1455_v56 = vpop.permute.xlu1 %1454 }
 0x7d9   : > { %v1461_v57 = vmul.f32 %v3040_v29, %v1455_v56  ;;  %v2512_v29 = vld [vmem:[%s3835_s4 + $0x1] ss:$0 sm:$0xff] }
 0x7db   : > { %1469 = vrot.lane.b32.xlu0 %v1461_v57, %s3849_s1  ;;  %v2514_v57 = vld [vmem:[%s3836_s5 + $0x1] ss:$0 sm:$0xff] }
 0x845   : > { %v1466_v58 = vpop.permute.xlu1 %1465 }
 0x846   : > { %v1474_v59 = vadd.f32 %v1466_v58, %v3319_v14 }
 0x848   : > { %v1477_v60 = vsel %vm665_vm2, %v1474_v59, 0.0 }
 0x849   : > { %1478 = vadd.xlane.f32.xlu1 %v1477_v60  ;;  %v1468_v61 = vpop.permute.xlu1 %1467 }
 0x84a   : > { %v1475_v62 = vadd.f32 %v1468_v61, %v3327_v21 }
 0x84c   : > { %v1480_v63 = vsel %vm665_vm2, %v1475_v62, 0.0 }
 0x84d   : > { %v1470_v0 = vpop.permute.xlu0 %1469  ;;  %1481 = vadd.xlane.f32.xlu0 %v1480_v63 }
 0x84e   : > { %v3578_v3 = vadd.f32 %v1470_v0, %v3331_v24 }
 0x850   : > { %v1483_v5 = vsel %vm672_vm4, %v3578_v3, 0.0 }
 0x851   : > { %1484 = vadd.xlane.f32.xlu0 %v1483_v5 }
 0x8d6   : > { %v1479_v6 = vpop.xlane.xlu1 %1478 }
 0x8d7   : > { %v1486_v7 = vmul.f32 0.03125, %v1479_v6 }
 0x8d9   : > { %v1489_v14 = vsub.f32 %v1474_v59, %v1486_v7 }
 0x8da   : > { %v1482_v9 = vpop.xlane.xlu0 %1481 }
 0x8db   : > { %v1487_v16 = vmul.f32 0.03125, %v1482_v9  ;;  %v1492_v17 = vmul.f32 %v1489_v14, %v1489_v14 }
 0x8dd   : > { %v1490_v18 = vsub.f32 %v1475_v62, %v1487_v16  ;;  %v1495_v21 = vsel %vm665_vm2, %v1492_v17, 0.0 }
 0x8de   : > { %v1485_v22 = vpop.xlane.xlu0 %1484  ;;  %1496 = vadd.xlane.f32.xlu0 %v1495_v21 }
 0x8df   : > { %v1488_v25 = vmul.f32 0.03125, %v1485_v22  ;;  %v1493_v27 = vmul.f32 %v1490_v18, %v1490_v18 }
 0x8e1   : > { %v1491_v24 = vsub.f32 %v3578_v3, %v1488_v25  ;;  %v1498_v28 = vsel %vm665_vm2, %v1493_v27, 0.0 }
 0x8e2   : > { %1499 = vadd.xlane.f32.xlu1 %v1498_v28 }
 0x8e3   : > { %v1494_v30 = vmul.f32 %v1491_v24, %v1491_v24 }
 0x8e5   : > { %v1501_v32 = vsel %vm672_vm4, %v1494_v30, 0.0 }
 0x8e6   : > { %1502 = vadd.xlane.f32.xlu0 %v1501_v32 }
 0x96b   : > { %v1497_v45 = vpop.xlane.xlu0 %1496 }
 0x96c   : > { %v1504_v46 = vmul.f32 0.03125, %v1497_v45 }
 0x96e   : > { %v1507_v47 = vadd.f32 1e-05, %v1504_v46 }
 0x96f   : > { %v1500_v49 = vpop.xlane.xlu1 %1499 }
 0x970   : > { %3041 = vrsqrt.f32 %v1507_v47  ;;  %v1505_v50 = vmul.f32 0.03125, %v1500_v49 }
 0x972   : > { %v1508_v52 = vadd.f32 1e-05, %v1505_v50 }
 0x973   : > { %v1503_v53 = vpop.xlane.xlu0 %1502 }
 0x974   : > { %3043 = vrsqrt.f32 %v1508_v52  ;;  %v1506_v19 = vmul.f32 0.03125, %v1503_v53 }
 0x976   : > { %v1509_v26 = vadd.f32 1e-05, %v1506_v19 }
 0x978   : > { %3045 = vrsqrt.f32 %v1509_v26 }
 0x97a   : > { %v3042_v55 = vpop.eup %3041 }
 0x97b   : > { %v1513_v56 = vmul.f32 %v3042_v55, %v1489_v14  ;;  %v2529_v14 = vld [vmem:[%s3840_s9 + $0x1] ss:$0 sm:$0xff] }
 0x97d   : > { %v1524_v58 = vmul.f32 %v2512_v29, %v1513_v56 }
 0x97e   : > { %v3044_v59 = vpop.eup %3043 }
 0x97f   : > { %v1535_v60 = vadd.f32 %v2514_v57, %v1524_v58  ;;  %v1514_v61 = vmul.f32 %v3044_v59, %v1490_v18 }
 0x981   : > { %2753 = vmatmul.mubr.msk.f32.vlgmr.msra.gmra.mrb[18].mxu1 %vm665_vm2, %v1535_v60  ;;  %2770 = vmatmul.mubr.msk.f32.vlgmr.msra.gmra.mrb[20].mxu0 %vm665_vm2, %v1535_v60  ;;  %v1525_v62 = vmul.f32 %v2512_v29, %v1514_v61 }
 0x982   : > { %v3046_v63 = vpop.eup %3045  ;;  %2755 = vmatprep.mubr.msk.f32.mxu1 %vm3140_vm0, %v3141_v4  ;;  %2772 = vmatprep.mubr.msk.f32.mxu0 %vm3140_vm0, %v3141_v4 }
 0x983   : > { %v1536_v0 = vadd.f32 %v2514_v57, %v1525_v62  ;;  %v1515_v5 = vmul.f32 %v3046_v63, %v1491_v24 }
 0x985   : > { %2756 = vmatmul.mubr.msk.f32.gmra.mrb[20].mxu1 %vm665_vm2, %v1536_v0  ;;  %2773 = vmatmul.mubr.msk.f32.gmra.mrb[22].mxu0 %vm665_vm2, %v1536_v0  ;;  %v1526_v6 = vmul.f32 %v2512_v29, %v1515_v5 }
 0x986   : > { %2758 = vmatprep.mubr.msk.f32.mxu1 %vm3140_vm0, %v3141_v4  ;;  %2775 = vmatprep.mubr.msk.f32.mxu0 %vm3140_vm0, %v3141_v4 }
 0x987   : > { %v1537_v7 = vadd.f32 %v2514_v57, %v1526_v6 }
 0x989   : > { %2759 = vmatmul.mubr.msk.f32.gmra.mrb[22].mxu1 %vm665_vm2, %v1537_v7  ;;  %2776 = vmatmul.mubr.msk.f32.gmra.mrb[24].mxu0 %vm665_vm2, %v1537_v7 }
 0x98a   : > { %2784 = vmatprep.mubr.msk.f32.mxu1 %vm3140_vm0, %v3141_v4  ;;  %2799 = vmatprep.mubr.msk.f32.mxu0 %vm3140_vm0, %v3141_v4 }
 0xa54   : > { %v1626_v9 = vpop.f32.mrb[18].mxu1  ;;  %v1719_v16 = vpop.f32.mrb[20].mxu0 }
 0xa55   : > { %v3641_v17 = vadd.f32 %v2529_v14, %v1719_v16  ;;  %v2754_v18 = vpop.f32.mrb[19].mxu1  ;;  %v2771_v21 = vpop.f32.mrb[21].mxu0  ;;  %v3659_v63 = vadd.f32 %v2520_v34, %v1626_v9 }
 0xa57   : > { %v1739_v22 = vand.u32 2147483647, %v3641_v17  ;;  %v1736_v56 = vmin.f32 %v3641_v17, 0.0  ;;  %v1733_v16 = vmul.f32 0.17677669, %v3659_v63 }
 0xa58   : > { %v1631_v25 = vpop.f32.mrb[20].mxu1  ;;  %v1724_v27 = vpop.f32.mrb[22].mxu0 }
 0xa59   : > { %v1742_v24 = vsub.f32 0.0, %v1739_v22  ;;  %v3644_v28 = vadd.f32 %v2529_v14, %v1724_v27  ;;  %v2757_v30 = vpop.f32.mrb[21].mxu1  ;;  %v2774_v32 = vpop.f32.mrb[23].mxu0  ;;  %v3657_v59 = vadd.f32 %v2520_v34, %v1631_v25 }
 0xa5b   : > { %v1745_v33 = vmul.f32 1.442695, %v1742_v24  ;;  %v1740_v23 = vand.u32 2147483647, %v3644_v28  ;;  %v1737_v57 = vmin.f32 %v3644_v28, 0.0  ;;  %v2988_v10 = vpack.i.bf16 %v3657_v59, %v3659_v63 }
 0xa5c   : > { %v1636_v35 = vpop.f32.mrb[22].mxu1  ;;  %v1729_v37 = vpop.f32.mrb[24].mxu0  ;;  %v1734_v7 = vmul.f32 0.17677669, %v3657_v59 }
 0xa5d   : > { %3047 = vpow2.f32 %v1745_v33  ;;  %v3650_v20 = vadd.f32 %v2520_v34, %v1636_v35  ;;  %v3652_v31 = vadd.f32 %v2529_v14, %v1729_v37  ;;  %v2760_v39 = vpop.f32.mrb[23].mxu1  ;;  %v2777_v40 = vpop.f32.mrb[25].mxu0  ;;  %v1743_v41 = vsub.f32 0.0, %v1740_v23 }
 0xa5e   : > { %v2983_v18 = vpack.i.bf16 %v1734_v7, %v1733_v16 }
 0xa5f   : > { %v1741_v42 = vand.u32 2147483647, %v3652_v31  ;;  %v1747_v43 = vmul.f32 1.442695, %v1743_v41  ;;  %v1738_v0 = vmin.f32 %v3652_v31, 0.0 }
 0xa61   : > { %v1744_v45 = vsub.f32 0.0, %v1741_v42  ;;  %3049 = vpow2.f32 %v1747_v43 }
 0xa63   : > { %v1749_v46 = vmul.f32 1.442695, %v1744_v45 }
 0xa65   : > { %3051 = vpow2.f32 %v1749_v46 }
 0xa67   : > { %v3048_v47 = vpop.eup %3047 }
 0xa68   : > { %v1751_v49 = vadd.f32 1.0, %v3048_v47 }
 0xa6a   : > { %3053 = vlog2.f32 %v1751_v49 }
 0xa6b   : > { %v3050_v50 = vpop.eup %3049 }
 0xa6c   : > { %v1752_v52 = vadd.f32 1.0, %v3050_v50 }
 0xa6e   : > { %3055 = vlog2.f32 %v1752_v52 }
 0xa6f   : > { %v3052_v53 = vpop.eup %3051 }
 0xa70   : > { %v1753_v19 = vadd.f32 1.0, %v3052_v53 }
 0xa72   : > { %3057 = vlog2.f32 %v1753_v19 }
 0xa74   : > { %v3054_v26 = vpop.eup %3053 }
 0xa75   : > { %v1755_v55 = vmul.f32 0.6931472, %v3054_v26 }
 0xa77   : > { %v1760_v61 = vsub.f32 %v1736_v56, %v1755_v55 }
 0xa78   : > { %v3056_v29 = vpop.eup %3055 }
 0xa79   : > { %v1757_v58 = vmul.f32 0.6931472, %v3056_v29 }
 0xa7b   : > { %v1761_v62 = vsub.f32 %v1737_v57, %v1757_v58 }
 0xa7c   : > { %v3058_v60 = vpop.eup %3057 }
 0xa7d   : > { %v1759_v5 = vmul.f32 0.6931472, %v3058_v60  ;;  %v2978_v6 = vpack.i.bf16 %v1761_v62, %v1760_v61 }
 0xa7f   : > { %v1762_v14 = vsub.f32 %v1738_v0, %v1759_v5  ;;  %2979 = vrot.lane.b32.xlu1 %v2978_v6, %s3142_s18 }
 0xa81   : > { %1770 = vrot.lane.b32.xlu0 %v1762_v14, %s3142_s18  ;;  %s3864_s18 = smov 32  }
 0xa85   : > { %2984 = vrot.lane.b32.xlu0 %v2983_v18, %s3144_s26 }
 0xaf1   : > { %v2980_v21 = vpop.permute.xlu1 %2979 }
 0xaf2   : > { %v2982_v22 = vunpack.i.h.bf16 %v2980_v21  ;;  %v2981_v9 = vunpack.i.l.bf16 %v2980_v21 }
 0xaf3   : > { %v1771_v25 = vpop.permute.xlu0 %1770 }
 0xaf4   : > { %v2891_v27 = vpack.c.bf16 %v2982_v22, %v2981_v9 }
 0xaf6   : > { %2892 = vmatpush3.bf16.msra.mxu1 %v2891_v27 }
 0xaf7   : > { %2782 = vmatprep.subr.mxu1 %v3141_v4  ;;  %v2985_v24 = vpop.permute.xlu0 %2984 }
 0xaf8   : > { %v2987_v30 = vunpack.i.h.bf16 %v2985_v24  ;;  %v2986_v32 = vunpack.i.l.bf16 %v2985_v24 }
 0xafa   : > { %2783 = vmatpush3.msk.msra.mxu1 %vm969_vm6, %v1771_v25  ;;  %v2897_v33 = vpack.c.bf16 %v2987_v30, %v2986_v32 }
 0xafb   : > { %2785 = vmatmul.mubr.msk.f32.vlgmr.msra.gmra.mrb[24].mxu1 %vm959_vm7, %v3426_v8  ;;  %2896 = vmatprep.subr.bf16.mxu1 %v3139_v2 }
 0xafc   : > { %2787 = vmatprep.mubr.msk.f32.mxu1 %vm3140_vm0, %v3141_v4 }
 0xaff   : > { %2788 = vmatmul.mubr.msk.f32.gmra.mrb[26].mxu1 %vm959_vm7, %v3443_v12 }
 0xb00   : > { %2790 = vmatprep.mubr.msk.f32.mxu1 %vm3140_vm0, %v3141_v4 }
 0xb01   : > { %2899 = vmatpush3.bf16.xpose.msk.msra.mxu1 %vm3501_vm13, %v2897_v33 }
 0xb02   : > { %2806 = vmatprep.subr.mxu1 %v3141_v4 }
 0xb03   : > { %2791 = vmatmul.mubr.msk.f32.gmra.mrb[28].mxu1 %vm959_vm7, %v3455_v15  ;;  %v1735_v15 = vmul.f32 0.17677669, %v3650_v20 }
 0xb04   : > { %2808 = vmatprep.mubr.msk.f32.mxu1 %vm3140_vm0, %v3141_v4 }
 0xbce   : > { %v1842_v8 = vpop.f32.mrb[24].mxu1 }
 0xbcf   : > { %v1856_v34 = vsub.f32 %v3641_v17, %v1842_v8  ;;  %1952 = vperm.xlu0 %2967, %v1842_v8   ;;  %v2786_v23 = vpop.f32.mrb[25].mxu1 }
 0xbd1   : > { %1861 = vperm.xlu1 %2966, %v1856_v34  }
 0xbd2   : > { %v1847_v12 = vpop.f32.mrb[26].mxu1 }
 0xbd3   : > { %v1857_v35 = vsub.f32 %v3644_v28, %v1847_v12  ;;  %v2789_v37 = vpop.f32.mrb[27].mxu1 }
 0xbd5   : > { %1866 = vperm.xlu1 %2966, %v1857_v35  }
 0xbd6   : > { %v1852_v48 = vpop.f32.mrb[28].mxu1 }
 0xbd7   : > { %v1858_v39 = vsub.f32 %v3652_v31, %v1852_v48  ;;  %1962 = vperm.xlu0 %2967, %v1852_v48   ;;  %v2792_v40 = vpop.f32.mrb[29].mxu1 }
 0xbd9   : > { %1871 = vperm.xlu1 %2966, %v1858_v39  }
 0xbdd   : > { %2000 = vrot.lane.b32.xlu1 %v1735_v15, %s3144_s26 }
 0xbe1   : > { %1957 = vperm.xlu1 %2966, %v1847_v12  }
 0xc50   : > { %v1862_v17 = vpop.permute.xlu1 %1861 }
 0xc51   : > { %v1874_v42 = vmul.f32 %v3486_v36, %v1862_v17  ;;  %v1953_v36 = vpop.permute.xlu0 %1952 }
 0xc54   : > { %v1867_v41 = vpop.permute.xlu1 %1866 }
 0xc55   : > { %v1875_v43 = vmul.f32 %v3489_v38, %v1867_v41 }
 0xc57   : > { %v2894_v28 = vpack.c.bf16 %v1875_v43, %v1874_v42 }
 0xc58   : > { %v1872_v45 = vpop.permute.xlu1 %1871 }
 0xc59   : > { %2895 = vmatpush3.bf16.msra.mxu0 %v2894_v28  ;;  %v1876_v31 = vmul.f32 %v3496_v44, %v1872_v45  ;;  %v1963_v44 = vpop.permute.xlu0 %1962 }
 0xc5a   : > { %2797 = vmatprep.subr.mxu0 %v3141_v4 }
 0xc5c   : > { %v2001_v46 = vpop.permute.xlu1 %2000 }
 0xc5d   : > { %2798 = vmatpush3.msk.msra.mxu0 %vm969_vm6, %v1876_v31  ;;  %2807 = vmatpush3.xpose.msk.msra.mxu1 %vm665_vm2, %v2001_v46 }
 0xc5e   : > { %2800 = vmatmul.mubr.msk.f32.vlgmr.msra.gmra.mrb[26].mxu0 %vm959_vm7, %v3145_v51  ;;  %2900 = vmatprep.subr.bf16.mxu0 %v3139_v2 }
 0xc5f   : > { %2823 = vmatprep.mubr.msk.f32.mxu0 %vm3140_vm0, %v3141_v4  ;;  %2909 = vmatprep.subr.bf16.mxu1 %v3139_v2 }
 0xc60   : > { %2809 = vmatmul.mubr.msk.f32.vlgmr.msra.gmra.mrb[30].mxu1 %vm665_vm2, %v3659_v63  ;;  %v1958_v49 = vpop.permute.xlu1 %1957 }
 0xc61   : > { %2811 = vmatprep.mubr.msk.f32.mxu1 %vm3140_vm0, %v3141_v4 }
 0xc64   : > { %2812 = vmatmul.mubr.msk.f32.gmra.mrb[32].mxu1 %vm665_vm2, %v3657_v59 }
 0xc65   : > { %2814 = vmatprep.mubr.msk.f32.mxu1 %vm3140_vm0, %v3141_v4 }
 0xc68   : > { %2815 = vmatmul.mubr.msk.f32.gmra.mrb[34].mxu1 %vm665_vm2, %v3650_v20 }
 0xc69   : > { %2847 = vmatprep.mubr.msk.f32.mxu1 %vm3140_vm0, %v3141_v4 }
 0xd31   : > { %v1946_v38 = vpop.f32.mrb[26].mxu0 }
 0xd32   : > { %v1968_v51 = vrot.slane %v1946_v38, %v1166_v54  ;;  %v2801_v47 = vpop.f32.mrb[27].mxu0 }
 0xd33   : > { %v2083_v50 = vpop.f32.mrb[30].mxu1 }
 0xd34   : > { %v2810_v52 = vpop.f32.mrb[31].mxu1  ;;  %v1970_v53 = vadd.f32 %v1968_v51, %v1958_v49  ;;  %v1969_v19 = vadd.f32 %v1968_v51, %v1953_v36  ;;  %v1971_v26 = vadd.f32 %v1968_v51, %v1963_v44 }
 0xd36   : > { %v1973_v55 = vsel %vm648_vm8, %v1970_v53, -1e+30  ;;  %v1972_v29 = vsel %vm647_vm5, %v1969_v19, -1e+30  ;;  %v1974_v60 = vsel %vm649_vm9, %v1971_v26, -1e+30 }
 0xd37   : > { %v2088_v56 = vpop.f32.mrb[32].mxu1  ;;  %v1978_v57 = vsel %vm959_vm7, %v1973_v55, -inf  ;;  %v1975_v54 = vsel %vm959_vm7, %v1972_v29, -inf  ;;  %v1981_v13 = vsel %vm1180_vm14, %v1974_v60, -inf  ;;  %v2240_v19 = vld [vmem:[%s3843_s12] sm:$0xff]  ;;  %v2241_v26 = vld [vmem:[%s3843_s12 + $0x8] sm:$0xff] }
 0xd38   : > { %v2813_v58 = vpop.f32.mrb[33].mxu1  ;;  %1979 = vmax.xlane.f32.xlu0 %v1978_v57  ;;  %1976 = vmax.xlane.f32.xlu1 %v1975_v54 }
 0xd3b   : > { %v2093_v61 = vpop.f32.mrb[34].mxu1 }
 0xd3c   : > { %v2816_v62 = vpop.f32.mrb[35].mxu1  ;;  %1982 = vmax.xlane.f32.xlu0 %v1981_v13  ;;  %v2238_v13 = vld [vmem:[%s3842_s11] sm:$0x1] }
 0xd49   : > { %2112 = vrot.lane.b32.xlu1 %v3650_v20, %s3146_s30 }
 0xd52   : > { %2989 = vrot.lane.b32.xlu0 %v2988_v10, %s3146_s30 }
 0xdc5   : > { %v1980_v0 = vpop.xlane.xlu0 %1979  ;;  %v1977_v5 = vpop.xlane.xlu1 %1976 }
 0xdc6   : > { %v1985_v6 = vsub.f32 %v1973_v55, %v1980_v0  ;;  %v1984_v7 = vsub.f32 %v1972_v29, %v1977_v5  ;;  %v2904_v55 = vpack.c.bf16 %v2241_v26, %v2240_v19  ;;  %v2243_v29 = vld [vmem:[%s3843_s12 + $0x18] sm:$0xff]  ;;  %v2319_v0 = vld [vmem:[%s3845_s14] sm:$0xff]  ;;  %v2320_v5 = vld [vmem:[%s3845_s14 + $0x8] sm:$0xff] }
 0xdc8   : > { %v1987_v14 = vmul.f32 1.442695, %v1984_v7  ;;  %v1989_v1 = vmul.f32 1.442695, %v1985_v6  ;;  %v2910_v6 = vpack.c.bf16 %v2320_v5, %v2319_v0  ;;  %v2244_v7 = vld [vmem:[%s3844_s13] sm:$0x1] }
 0xdc9   : > { %v1983_v11 = vpop.xlane.xlu0 %1982  ;;  %v2113_v63 = vpop.permute.xlu1 %2112 }
 0xdca   : > { %v1986_v16 = vsub.f32 %v1974_v60, %v1983_v11  ;;  %3059 = vpow2.f32 %v1987_v14  ;;  %v2104_v34 = vsub.f32 0.0, %v1983_v11  ;;  %2911 = vmatpush3.bf16.msra.mxu1 %v2910_v6 }
 0xdcb   : > { %3061 = vpow2.f32 %v1989_v1 }
 0xdcc   : > { %v1991_v18 = vmul.f32 1.442695, %v1986_v16  ;;  %v2105_v23 = vmul.f32 1.442695, %v2104_v34 }
 0xdcd   : > { %v2990_v21 = vpop.permute.xlu0 %2989 }
 0xdce   : > { %3063 = vpow2.f32 %v1991_v18  ;;  %v2992_v22 = vunpack.i.h.bf16 %v2990_v21  ;;  %v2991_v9 = vunpack.i.l.bf16 %v2990_v21  ;;  %v2321_v18 = vld [vmem:[%s3846_s15] sm:$0x1] }
 0xdcf   : > { %3065 = vpow2.f32 %v2105_v23 }
 0xdd0   : > { %v2901_v25 = vpack.c.bf16 %v2992_v22, %v2991_v9 }
 0xdd2   : > { %2902 = vmatpush3.bf16.msra.mxu0 %v2901_v25 }
 0xdd3   : > { %2821 = vmatprep.subr.mxu0 %v3141_v4 }
 0xdd4   : > { %v3060_v59 = vpop.eup %3059 }
 0xdd5   : > { %v2097_v27 = vmul.f32 %v3060_v59, %v2083_v50  ;;  %v3062_v24 = vpop.eup %3061 }
 0xdd6   : > { %2822 = vmatpush3.msk.msra.mxu0 %vm969_vm6, %v2113_v63  ;;  %v2098_v33 = vmul.f32 %v3062_v24, %v2088_v56 }
 0xdd7   : > { %2903 = vmatprep.subr.bf16.mxu0 %v3139_v2  ;;  %2824 = vmatmul.mubr.msk.f32.vlgmr.msra.gmra.mrb[28].mxu0 %vm959_vm7, %v2097_v27 }
 0xdd8   : > { %v3064_v30 = vpop.eup %3063  ;;  %2826 = vmatprep.mubr.msk.f32.mxu0 %vm3140_vm0, %v3141_v4  ;;  %2905 = vmatpush3.bf16.msra.mxu0 %v2904_v55 }
 0xdd9   : > { %v2099_v32 = vmul.f32 %v3064_v30, %v2093_v61  ;;  %v3066_v37 = vpop.eup %3065  ;;  %2906 = vmatprep.subr.bf16.mxu0 %v3139_v2  ;;  %v2236_v61 = vld [vmem:[%s3841_s10] sm:$0x1] }
 0xddb   : > { %v2100_v8 = vsel %vm1180_vm14, %v2099_v32, 0.0  ;;  %2827 = vmatmul.mubr.msk.f32.gmra.mrb[30].mxu0 %vm959_vm7, %v2098_v33 }
 0xddc   : > { %2101 = vadd.xlane.f32.xlu1 %v2100_v8  ;;  %2829 = vmatprep.mubr.msk.f32.mxu0 %vm3140_vm0, %v3141_v4 }
 0xddf   : > { %2830 = vmatmul.mubr.msk.f32.gmra.mrb[32].mxu0 %vm959_vm7, %v2099_v32 }
 0xde0   : > { %2840 = vmatprep.mubr.msk.f32.mxu0 %vm3140_vm0, %v3141_v4  ;;  %v2549_v4 = vmul.f32 -1.442695, %v3650_v20  ;;  %vm2396_vm0 = vcmask 32768  }
 0xe69   : > { %v2102_v12 = vpop.xlane.xlu1 %2101 }
 0xe6a   : > { %v2103_v35 = vand.u32 2147483647, %v2102_v12 }
 0xe6c   : > { %v2107_v48 = vmax.f32 %v2103_v35, %v3066_v37 }
 0xe6e   : > { %3067 = vrcp.f32 %v2107_v48 }
 0xe6f   : > { %3069 = vpow2.f32 %v2549_v4 }
 0xe78   : > { %v3068_v41 = vpop.eup %3067 }
 0xe79   : > { %v3070_v45 = vpop.eup %3069 }
 0xe7a   : > { %v2210_v31 = vadd.f32 1.0, %v3070_v45 }
 0xe7c   : > { %3071 = vrcp.f32 %v2210_v31 }
 0xe86   : > { %v3072_v46 = vpop.eup %3071 }
 0xeaa   : > { %v2193_v39 = vpop.f32.mrb[28].mxu0 }
 0xeab   : > { %v2825_v40 = vpop.f32.mrb[29].mxu0 }
 0xeae   : > { %v2197_v15 = vpop.f32.mrb[30].mxu0 }
 0xeaf   : > { %v2828_v17 = vpop.f32.mrb[31].mxu0 }
 0xeb2   : > { %v2201_v42 = vpop.f32.mrb[32].mxu0 }
 0xeb3   : > { %v2206_v43 = vmul.f32 %v3068_v41, %v2201_v42  ;;  %v2831_v28 = vpop.f32.mrb[33].mxu0 }
 0xeb5   : > { %2214 = vrot.lane.b32.xlu0 %v2206_v43, %s3144_s26  ;;  %s513_s26 = scalar_lea.vmem [#allocation2], %s512_s19 }
 0xeb6   : > { %s2411_s30 = sshll.u32 %s513_s26, 4  ;;  %s3791_s30 = int_to_ptr.vmem [resolvable:$true] %s2411_s30 }
 0xeb7   : > { %s3075_s29 = scalar_lea.vmem %s3791_s30, 16 }
 0xeb8   : > { %p3076_p11 = scmp.ne.s32.totalorder %s3791_s30, %s3075_s29 }
 0xeba   : > { %p3077_p12 = pnand %p3076_p11, %p3272_p5 }
 0xebc   : > { %p3078_p13 = pneg %p3077_p12 }
 0xf27   : > { %v2215_v36 = vpop.permute.xlu0 %2214 }
 0xf28   : > { %v2217_v38 = vmul.f32 %v3072_v46, %v2215_v36 }
 0xf2a   : > { %2219 = vrot.lane.b32.xlu0 %v2217_v38, %s3864_s18  ;;  %s2552_s18 = sshll.u32 %s3255_s25, 4  ;;  %s3148_s25 = smov [#allocation2]  }
 0xf2b   : > { %s3789_s28 = scalar_lea.hbm %s3847_s16, %s2552_s18  ;;  %s3079_s1 = sshll.u32 %s3148_s25, 4  ;;  %s3080_s1 = int_to_ptr.vmem [resolvable:$false] %s3079_s1 }
 0xf2c   : > { %s3081_s20 = scalar_lea.vmem %s3080_s1, 32  ;;  %p3082_p0 = scmp.lt.s32.totalorder %s3791_s30, %s3080_s1 }
 0xf2d   : > { %p3083_p1 = scmp.lt.s32.totalorder %s3081_s20, %s3075_s29 }
 0xf2f   : > { %p3084_p2 = por %p3083_p1, %p3082_p0 }
 0xf31   : > { %p3085_p3 = pnand %p3084_p2, %p3078_p13 }
 0xf9c   : > { %v2220_v44 = vpop.permute.xlu0 %2219 }
 0xf9d   : > { %v2222_v51 = vadd.f32 %v2220_v44, %v3578_v3  ;;  %v2242_v3 = vld [vmem:[%s3843_s12 + $0x10] sm:$0xff] }
 0xf9e   : > { %v2907_v56 = vpack.c.bf16 %v2243_v29, %v2242_v3 }
 0xf9f   : > { %v2223_v47 = vsel %vm672_vm4, %v2222_v51, 0.0 }
 0xfa0   : > { %2224 = vadd.xlane.f32.xlu0 %v2223_v47  ;;  %2908 = vmatpush3.bf16.msra.mxu0 %v2907_v56 }
0x102d   : > { %v2225_v49 = vpop.xlane.xlu0 %2224 }
0x102e   : > { %v2226_v50 = vmul.f32 0.03125, %v2225_v49 }
0x1030   : > { %v2227_v52 = vsub.f32 %v2222_v51, %v2226_v50 }
0x1032   : > { %v2228_v53 = vmul.f32 %v2227_v52, %v2227_v52 }
0x1034   : > { %v2229_v20 = vsel %vm672_vm4, %v2228_v53, 0.0 }
0x1035   : > { %2230 = vadd.xlane.f32.xlu1 %v2229_v20 }
0x10c2   : > { %v2231_v57 = vpop.xlane.xlu1 %2230 }
0x10c3   : > { %v2232_v54 = vmul.f32 0.03125, %v2231_v57 }
0x10c5   : > { %v2233_v58 = vadd.f32 1e-05, %v2232_v54 }
0x10c7   : > { %3073 = vrsqrt.f32 %v2233_v58 }
0x10d1   : > { %v3074_v60 = vpop.eup %3073 }
0x10d2   : > { %v2235_v2 = vmul.f32 %v3074_v60, %v2227_v52 }
0x10d4   : > { %v2237_v62 = vmul.f32 %v2236_v61, %v2235_v2 }
0x10d6   : > { %v2239_v10 = vadd.f32 %v2238_v13, %v2237_v62 }
0x10d8   : > { %2841 = vmatmul.mubr.msk.f32.vlgmr.msra.gmra.mrb[34].mxu0 %vm665_vm2, %v2239_v10 }
0x11ab   : > { %v2314_v14 = vpop.f32.mrb[34].mxu0 }
0x11ac   : > { %v2315_v1 = vadd.f32 %v2314_v14, %v2244_v7  ;;  %v2842_v11 = vpop.f32.mrb[35].mxu0 }
0x11ae   : > { %v2318_v16 = vmax.f32 %v2315_v1, 0.0 }
0x11b0   : > { %2848 = vmatmul.mubr.msk.f32.vlgmr.msra.gmra.mrb[36].mxu1 %vm2322_vm15, %v2318_v16 }
0x1283   : > { %v2392_v21 = vpop.f32.mrb[36].mxu1 }
0x1284   : > { %v2393_v22 = vadd.f32 %v2392_v21, %v2321_v18  ;;  %v2849_v9 = vpop.f32.mrb[37].mxu1 }
0x1286   : > { %2397 = vst.msk [vmem:[%s513_s26] sm:$0x1] %vm2396_vm0, %v2393_v22 }
0x1287   : > { %3088 = shalt.err (!%p3085_p3)
}
0x1288   : > { %s3089_s19 = scalar_lea.hbm %s3789_s28, 16  ;;  %s3093_s2 = scalar_lea.hbm %s3847_s16, 32 }
0x1289   : > { %p3090_p4 = scmp.ne.s32.totalorder %s3789_s28, %s3089_s19  ;;  %p3094_p9 = scmp.lt.u32.totalorder %s3789_s28, %s3847_s16 }
0x128a   : > { %p3095_p10 = scmp.lt.u32.totalorder %s3093_s2, %s3089_s19  ;;  %p3097_p12 = scmp.lt.u32.totalorder %s3089_s19, %s3789_s28 }
0x128b   : > { %p3091_p7 = pnand %p3090_p4, %p3272_p5 }
0x128c   : > { %p3096_p11 = por %p3095_p10, %p3094_p9 }
0x128d   : > { %p3092_p8 = pneg %p3091_p7 }
0x128e   : > { %p3098_p13 = por %p3097_p12, %p3096_p11 }
0x1290   : > { %p3099_p0 = pnand %p3098_p13, %p3092_p8 }
0x1292   : > { %3102 = shalt.err (!%p3099_p0)
}
0x1293   : > { %2913 = dma.vmem_to_hbm [thread:$0]  (%p3272_p5), %s3791_s30, 16, %s3789_s28, %s2399_s23  }
0x1294 PF: > { %p2919_p1 = scmp.ge.s32.totalorder %s3137_s24, 2  ;;  %s2423_s29 = sand.u32 1, %s3125_s21  }
0x1295   : > { %s2424_s1 = scalar_lea.sflag [#allocation3], %s2423_s29 }
0x1296   : > { %p2916_p2 = pnand %p2919_p1, %p3276_p6 }
0x1298   : > { %3120 = dma.done.wait (!%p2916_p2), %s2424_s1, 16  }
0x1299   : > { %3122 = vsyncadd (!%p2916_p2), %s2424_s1, 4294967280  ;;  %s3865_s20 = sld [smem:[#allocation5_spill]]  ;;  %s3866_s23 = sld [smem:[#allocation6_spill]] }
0x129a   : > { %p26_p3 = scmp.ge.s32.totalorder %s3259_s27, 4   ;;  %s3867_s21 = smov %s3129_s22 }
0x129b   : > { %s3869_s24 = smov %s3259_s27 }
0x129c   :  { %28 = sbr.rel (!%p26_p3) target bundleno = 8 (0x8), region = 125 }
0x129f   : > { %s3868_s22 = smov %s3865_s20 }
0x12a3   :  { %2428 = vsyncpa [#allocation3], 1 }
0x12a4   :  { %2430 = vsyncpa [#allocation3 + $0x1], 1 }

</bundles_post_ra>
